<compile_context>
chip_gen: v6e
topology: v6e:2x2x1
jax: 0.10.0
libtpu: 0.0.40
codegen_flags: <defaults>
</compile_context>

<pallas_src>
import functools

import jax
import jax.numpy as jnp
from jax import lax
from jax.experimental import pallas as pl
from jax.experimental.pallas import tpu as pltpu


# ---------------------------------------------------------------------------
# Kernel: grid = (batch_block, layer).  One grid step = one full encoder layer
# for `Bt` batch elements.  The f32 hidden state is carried in VMEM scratch
# across the (innermost, "arbitrary") layer axis; layer l+1 weights are
# prefetched while layer l computes.
# ---------------------------------------------------------------------------
def _siglip_encoder_kernel(
    x_ref,        # (Bt, S, D) f32  input embeddings (read only at layer 0)
    small_ref,    # (1, 9, D)  f32  packed: ln1_g, ln1_b, bq, bk, bv, bo, ln2_g, ln2_b, b2
    wqkv_ref,     # (1, D, 3D) bf16 fused q/k/v projection weight
    wo_ref,       # (1, D, D)  bf16 out projection weight
    w1_ref,       # (1, D, I)  bf16 fc1 weight
    b1_ref,       # (1, 1, I)  f32  fc1 bias
    w2_ref,       # (1, I, D)  bf16 fc2 weight
    out_ref,      # (Bt, S, D) f32
    h_ref,        # VMEM (Bt, S, D) f32 — residual stream carried across layers
    *, num_heads, head_dim, eps, mlp_tile,
):
    l = pl.program_id(1)
    n_layers = pl.num_programs(1)
    Bt, S, D = x_ref.shape
    I = w1_ref.shape[2]

    @pl.when(l == 0)
    def _():
        h_ref[...] = x_ref[...]          # fresh hidden state for this batch block

    # ---- unpack small packed per-layer params (each (1, D)) ----
    ln1_g = small_ref[0, 0:1, :]
    ln1_b = small_ref[0, 1:2, :]
    bq    = small_ref[0, 2:3, :]
    bk    = small_ref[0, 3:4, :]
    bv    = small_ref[0, 4:5, :]
    bo    = small_ref[0, 5:6, :]
    ln2_g = small_ref[0, 6:7, :]
    ln2_b = small_ref[0, 7:8, :]
    b2    = small_ref[0, 8:9, :]

    scale = head_dim ** -0.5
    gk = 0.7978845608028654              # sqrt(2/pi) for tanh-gelu

    def layer_norm(v, g, b):
        mu = jnp.mean(v, axis=-1, keepdims=True)
        var = jnp.mean(jnp.square(v - mu), axis=-1, keepdims=True)
        return (v - mu) * lax.rsqrt(var + eps) * g + b

    n_full = I // mlp_tile               # full lane-aligned MLP chunks (static)
    rem = I - n_full * mlp_tile          # static remainder chunk
    aligned = (mlp_tile % 128) == 0

    for bi in range(Bt):                 # static, Bt is small (1..8)
        x = h_ref[bi]                    # (S, D) f32

        # ---------------- attention ----------------
        xn_b = layer_norm(x, ln1_g, ln1_b).astype(jnp.bfloat16)
        # fused QKV: one (S, D) @ (D, 3D) MXU matmul, f32 accumulation
        qkv = jnp.dot(xn_b, wqkv_ref[0], preferred_element_type=jnp.float32)
        # fold the softmax scale into q once (instead of per-head score scaling)
        qb = ((qkv[:, 0:D] + bq) * scale).astype(jnp.bfloat16)
        kb = (qkv[:, D:2 * D] + bk).astype(jnp.bfloat16)
        vb = (qkv[:, 2 * D:3 * D] + bv).astype(jnp.bfloat16)

        heads = []
        for h in range(num_heads):       # static per-head loop; softmax in f32
            sl = slice(h * head_dim, (h + 1) * head_dim)
            s = lax.dot_general(qb[:, sl], kb[:, sl], (((1,), (1,)), ((), ())),
                                preferred_element_type=jnp.float32)
            s = s - jnp.max(s, axis=-1, keepdims=True)
            p = jnp.exp(s)
            p = p * pl.reciprocal(jnp.sum(p, axis=-1, keepdims=True), approx=True)
            a_h = jnp.dot(p.astype(jnp.bfloat16), vb[:, sl],
                          preferred_element_type=jnp.float32)
            heads.append(a_h.astype(jnp.bfloat16))
        # single K=D out-projection on the lane-concatenated context
        ctx = jnp.concatenate(heads, axis=-1)                      # (S, D) bf16
        attn = jnp.dot(ctx, wo_ref[0], preferred_element_type=jnp.float32) + bo
        h1 = x + attn                                              # residual 1

        # ---------------- MLP (chunked over the intermediate dim) ----------
        hn_b = layer_norm(h1, ln2_g, ln2_b).astype(jnp.bfloat16)

        def mlp_chunk(c0, width):
            z = (jnp.dot(hn_b, w1_ref[0, :, pl.ds(c0, width)],
                         preferred_element_type=jnp.float32)
                 + b1_ref[0, :, pl.ds(c0, width)])
            g = 0.5 * z * (1.0 + jnp.tanh(gk * (z + 0.044715 * (z * z * z))))
            return jnp.dot(g.astype(jnp.bfloat16),
                           w2_ref[0, pl.ds(c0, width), :],
                           preferred_element_type=jnp.float32)

        def chunk_body(c, acc):
            c0 = c * mlp_tile
            if aligned:
                c0 = pl.multiple_of(c0, 128)
            return acc + mlp_chunk(c0, mlp_tile)

        m = lax.fori_loop(0, n_full, chunk_body, jnp.zeros((S, D), jnp.float32))
        if rem > 0:                       # static remainder tile
            m = m + mlp_chunk(n_full * mlp_tile, rem)
        m = m + b2

        h_ref[bi] = h1 + m                # residual 2, carried to next layer

    @pl.when(l == n_layers - 1)
    def _():
        out_ref[...] = h_ref[...]         # one lane-dense store per batch block


# ---------------------------------------------------------------------------
# Wrapper: one pallas_call for the full encoder stack.
# ---------------------------------------------------------------------------
def siglip_encoder(x, params, *, num_heads, eps, batch_block=1):
    B, S, D = x.shape
    L = params["wqkv"].shape[0]
    I = params["w1"].shape[2]
    assert D % num_heads == 0
    head_dim = D // num_heads

    batch_block = max(1, min(batch_block, B))
    assert B % batch_block == 0, "batch_block must divide batch"
    bt = batch_block

    # Lane-aligned MLP intermediate chunk + remainder handled in-kernel.
    mlp_tile = min(512, (I // 128) * 128) if I >= 128 else I

    kernel = functools.partial(
        _siglip_encoder_kernel,
        num_heads=num_heads, head_dim=head_dim, eps=eps, mlp_tile=mlp_tile)

    # ---- VMEM budgeting (clamped to physical VMEM on this chip) ----------
    attn_w = (3 * D * D + D * D) * 2                 # wqkv + wo, bf16
    fc_w = 2 * D * I * 2                             # w1 + w2, bf16
    small_w = (9 * D + I) * 4                        # packed LN/bias + b1, f32
    x_blk = bt * S * D * 4
    out_blk = bt * S * D * 4
    scratch = bt * S * D * 4
    acts = 36 * S * D + 8 * S * S + 8 * S * mlp_tile   # rough peak bytes / elem

    try:
        phys_vmem = pltpu.get_tpu_info().vmem_capacity_bytes
    except Exception:
        phys_vmem = 64 * 2**20                       # conservative (v7x per-core)
    ceiling = phys_vmem - (6 << 20)                  # headroom for compiler scratch

    fully_double = (2 * (attn_w + fc_w + small_w + x_blk + out_blk)
                    + scratch + acts + (2 << 20))
    tight = fully_double > ceiling
    if tight:
        # Single-buffer the big fc weights and the (layer-0-only) input block.
        fc_buf, x_buf = 1, 1
        need = (2 * (attn_w + small_w + out_blk) + fc_w + x_blk
                + scratch + acts + (2 << 20))
    else:
        fc_buf, x_buf = None, None
        need = fully_double
    vmem_limit = int(min(ceiling, max(32 << 20, need)))

    # ---- BlockSpecs -------------------------------------------------------
    def stacked_spec(shape, buf=None):
        idx = lambda b, l: (l,) + (0,) * len(shape)
        if buf is None:
            return pl.BlockSpec((1,) + shape, idx)
        return pl.BlockSpec((1,) + shape, idx, pipeline_mode=pl.Buffered(buf))

    x_idx = lambda b, l: (b, 0, 0)
    if x_buf is None:
        x_spec = pl.BlockSpec((bt, S, D), x_idx)
    else:
        x_spec = pl.BlockSpec((bt, S, D), x_idx, pipeline_mode=pl.Buffered(x_buf))

    in_specs = [
        x_spec,                                 # hidden_states input
        stacked_spec((9, D)),                   # packed small params
        stacked_spec((D, 3 * D)),               # fused qkv weight
        stacked_spec((D, D)),                   # out_proj weight
        stacked_spec((D, I), fc_buf),           # fc1 weight
        stacked_spec((1, I)),                   # fc1 bias
        stacked_spec((I, D), fc_buf),           # fc2 weight
    ]

    return pl.pallas_call(
        kernel,
        out_shape=jax.ShapeDtypeStruct((B, S, D), jnp.float32),
        grid_spec=pltpu.PrefetchScalarGridSpec(
            num_scalar_prefetch=0,
            grid=(B // bt, L),                              # layer axis innermost
            in_specs=in_specs,
            out_specs=pl.BlockSpec((bt, S, D), lambda b, l: (b, 0, 0)),
            scratch_shapes=[pltpu.VMEM((bt, S, D), jnp.float32)],
        ),
        compiler_params=pltpu.CompilerParams(
            dimension_semantics=("parallel", "arbitrary"),
            vmem_limit_bytes=vmem_limit,
        ),
    )(x, params["small"], params["wqkv"], params["wo"],
      params["w1"], params["b1"], params["w2"])


# ---------------------------------------------------------------------------
# Deterministic parameter init.  PyTorch nn.Linear weight is (out, in); we
# transpose to (in, out), fuse Q/K/V, pack small params, stack over layers,
# and cast matmul weights to bf16.
# Packed small layout (rows of (L, 9, D)):
#   0 ln1_g, 1 ln1_b, 2 bq, 3 bk, 4 bv, 5 bo, 6 ln2_g, 7 ln2_b, 8 b2
# ---------------------------------------------------------------------------
def init_params(key, L, D, I):
    layer_keys = jax.random.split(key, L)

    def one(k):
        ks = jax.random.split(k, 12)
        n = lambda kk, s: 0.02 * jax.random.normal(kk, s, jnp.float32)
        wq, bq = n(ks[0], (D, D)).T, n(ks[1], (D,))
        wk, bk = n(ks[2], (D, D)).T, n(ks[3], (D,))
        wv, bv = n(ks[4], (D, D)).T, n(ks[5], (D,))
        wo, bo = n(ks[6], (D, D)).T, n(ks[7], (D,))
        w1, b1 = n(ks[8], (I, D)).T, n(ks[9], (I,))
        w2, b2 = n(ks[10], (D, I)).T, n(ks[11], (D,))
        ln1_g, ln1_b = jnp.ones((D,), jnp.float32), jnp.zeros((D,), jnp.float32)
        ln2_g, ln2_b = jnp.ones((D,), jnp.float32), jnp.zeros((D,), jnp.float32)
        return {
            "wqkv": jnp.concatenate([wq, wk, wv], axis=1),              # (D, 3D)
            "wo": wo, "w1": w1, "w2": w2,
            "small": jnp.stack([ln1_g, ln1_b, bq, bk, bv, bo,
                                ln2_g, ln2_b, b2]),                     # (9, D)
            "b1": b1.reshape(1, I),
        }

    per_layer = [one(k) for k in layer_keys]
    stacked = {name: jnp.stack([p[name] for p in per_layer])
               for name in per_layer[0]}
    for name in ("wqkv", "wo", "w1", "w2"):
        stacked[name] = stacked[name].astype(jnp.bfloat16)
    return stacked


# ---------------------------------------------------------------------------
# Pure-JAX reference mirroring the PyTorch forward (same bf16 matmul operands
# / f32 accumulation as the kernel) for correctness checking.
# ---------------------------------------------------------------------------
def ref_encoder(x, p, *, num_heads, eps):
    B, S, D = x.shape
    hd = D // num_heads
    L = p["wqkv"].shape[0]
    bf = jnp.bfloat16

    def ln(v, g, b):
        mu = v.mean(-1, keepdims=True)
        var = ((v - mu) ** 2).mean(-1, keepdims=True)
        return (v - mu) / jnp.sqrt(var + eps) * g + b

    def mm(a, w):
        return jnp.dot(a.astype(bf), w, preferred_element_type=jnp.float32)

    h = x
    for l in range(L):
        sm = p["small"][l].astype(jnp.float32)
        ln1_g, ln1_b, bq, bk, bv, bo, ln2_g, ln2_b, b2 = [sm[i] for i in range(9)]
        wqkv = p["wqkv"][l]
        wq, wk, wv = wqkv[:, 0:D], wqkv[:, D:2 * D], wqkv[:, 2 * D:3 * D]

        xn = ln(h, ln1_g, ln1_b)
        q = mm(xn, wq) + bq
        k = mm(xn, wk) + bk
        v = mm(xn, wv) + bv
        qh = q.reshape(B, S, num_heads, hd).transpose(0, 2, 1, 3).astype(bf)
        kh = k.reshape(B, S, num_heads, hd).transpose(0, 2, 1, 3).astype(bf)
        vh = v.reshape(B, S, num_heads, hd).transpose(0, 2, 1, 3).astype(bf)
        s = jnp.einsum("bhqd,bhkd->bhqk", qh, kh,
                       preferred_element_type=jnp.float32) * hd ** -0.5
        w_attn = jax.nn.softmax(s, axis=-1)
        a = jnp.einsum("bhqk,bhkd->bhqd", w_attn.astype(bf), vh,
                       preferred_element_type=jnp.float32)
        ctx = a.transpose(0, 2, 1, 3).reshape(B, S, D)
        attn = mm(ctx, p["wo"][l]) + bo
        h1 = h + attn
        hn = ln(h1, ln2_g, ln2_b)
        z = mm(hn, p["w1"][l]) + p["b1"][l]
        gk = 0.7978845608028654
        g = 0.5 * z * (1.0 + jnp.tanh(gk * (z + 0.044715 * (z * z * z))))
        h = h1 + mm(g, p["w2"][l]) + b2
    return h


# ---------------------------------------------------------------------------
if __name__ == "__main__":
    # Small SiglipVisionConfig-like setup.
    B, S, D, I = 4, 8, 32, 64
    NUM_HEADS, NUM_LAYERS, EPS = 4, 3, 1e-6

    root = jax.random.PRNGKey(0)
    k_in, k_p = jax.random.split(root)
    input_embeds = jax.random.normal(k_in, (B, S, D), jnp.float32)
    params = init_params(k_p, NUM_LAYERS, D, I)

    out = siglip_encoder(input_embeds, params, num_heads=NUM_HEADS, eps=EPS,
                         batch_block=2)
    out = jax.block_until_ready(out)

    expected = ref_encoder(input_embeds, params, num_heads=NUM_HEADS, eps=EPS)
    assert out.shape == (B, S, D) and out.dtype == jnp.float32
    max_err = float(jnp.max(jnp.abs(out - expected)))
    assert jnp.allclose(out, expected, atol=5e-3, rtol=5e-3), max_err

    print("KERNEL_OK")
</pallas_src>

<mosaic_0001>
module attributes {stable_mosaic.version = 11 : i64} {
  func.func @_siglip_encoder_kernel(%arg0: i32, %arg1: i32, %arg2: memref<2x8x32xf32, #tpu.memory_space<vmem>>, %arg3: memref<1x9x32xf32, #tpu.memory_space<vmem>>, %arg4: memref<1x32x96xbf16, #tpu.memory_space<vmem>>, %arg5: memref<1x32x32xbf16, #tpu.memory_space<vmem>>, %arg6: memref<1x32x64xbf16, #tpu.memory_space<vmem>>, %arg7: memref<1x1x64xf32, #tpu.memory_space<vmem>>, %arg8: memref<1x64x32xbf16, #tpu.memory_space<vmem>>, %arg9: memref<2x8x32xf32, #tpu.memory_space<vmem>>, %arg10: memref<2x8x32xf32, #tpu.memory_space<vmem>>) attributes {dimension_semantics = [#tpu.dimension_semantics<parallel>, #tpu.dimension_semantics<arbitrary>], iteration_bounds = array<i64: 2, 3>, scalar_prefetch = 0 : i64, scratch_operands = 1 : i64, tpu.core_type = #tpu.core_type<tc>, window_params = [{transform_indices = @transform_0, window_bounds = array<i64: 2, 8, 32>}, {transform_indices = @transform_1, window_bounds = array<i64: 1, 9, 32>}, {transform_indices = @transform_2, window_bounds = array<i64: 1, 32, 96>}, {transform_indices = @transform_3, window_bounds = array<i64: 1, 32, 32>}, {transform_indices = @transform_4, window_bounds = array<i64: 1, 32, 64>}, {transform_indices = @transform_5, window_bounds = array<i64: 1, 1, 64>}, {transform_indices = @transform_6, window_bounds = array<i64: 1, 64, 32>}, {transform_indices = @transform_7, window_bounds = array<i64: 2, 8, 32>}]} {
    %c0_i32 = arith.constant 0 : i32
    %0 = arith.cmpi eq, %arg1, %c0_i32 : i32
    %1 = arith.extui %0 : i1 to i32
    %c0_i32_0 = arith.constant 0 : i32
    %2 = arith.cmpi ne, %1, %c0_i32_0 : i32
    scf.if %2 {
      %c0_131 = arith.constant 0 : index
      %c0_132 = arith.constant 0 : index
      %c0_133 = arith.constant 0 : index
      %376 = vector.load %arg2[%c0_131, %c0_132, %c0_133] : memref<2x8x32xf32, #tpu.memory_space<vmem>>, vector<2x8x32xf32>
      %c0_134 = arith.constant 0 : index
      %c0_135 = arith.constant 0 : index
      %c0_136 = arith.constant 0 : index
      %377 = vector.load %arg10[%c0_134, %c0_135, %c0_136] : memref<2x8x32xf32, #tpu.memory_space<vmem>>, vector<2x8x32xf32>
      tpu.vector_store %arg10[%c0_134, %c0_135, %c0_136], %376 {strides = array<i32>} : memref<2x8x32xf32, #tpu.memory_space<vmem>>, vector<2x8x32xf32>,
    } else {
    }
    %c0 = arith.constant 0 : index
    %c0_1 = arith.constant 0 : index
    %c0_2 = arith.constant 0 : index
    %3 = vector.load %arg3[%c0, %c0_1, %c0_2] : memref<1x9x32xf32, #tpu.memory_space<vmem>>, vector<1x1x32xf32>
    %4 = vector.shape_cast %3 : vector<1x1x32xf32> to vector<1x32xf32>
    %c0_3 = arith.constant 0 : index
    %c1 = arith.constant 1 : index
    %c0_4 = arith.constant 0 : index
    %5 = vector.load %arg3[%c0_3, %c1, %c0_4] : memref<1x9x32xf32, #tpu.memory_space<vmem>>, vector<1x1x32xf32>
    %6 = vector.shape_cast %5 : vector<1x1x32xf32> to vector<1x32xf32>
    %c0_5 = arith.constant 0 : index
    %c2 = arith.constant 2 : index
    %c0_6 = arith.constant 0 : index
    %7 = vector.load %arg3[%c0_5, %c2, %c0_6] : memref<1x9x32xf32, #tpu.memory_space<vmem>>, vector<1x1x32xf32>
    %8 = vector.shape_cast %7 : vector<1x1x32xf32> to vector<1x32xf32>
    %c0_7 = arith.constant 0 : index
    %c3 = arith.constant 3 : index
    %c0_8 = arith.constant 0 : index
    %9 = vector.load %arg3[%c0_7, %c3, %c0_8] : memref<1x9x32xf32, #tpu.memory_space<vmem>>, vector<1x1x32xf32>
    %10 = vector.shape_cast %9 : vector<1x1x32xf32> to vector<1x32xf32>
    %c0_9 = arith.constant 0 : index
    %c4 = arith.constant 4 : index
    %c0_10 = arith.constant 0 : index
    %11 = vector.load %arg3[%c0_9, %c4, %c0_10] : memref<1x9x32xf32, #tpu.memory_space<vmem>>, vector<1x1x32xf32>
    %12 = vector.shape_cast %11 : vector<1x1x32xf32> to vector<1x32xf32>
    %c0_11 = arith.constant 0 : index
    %c5 = arith.constant 5 : index
    %c0_12 = arith.constant 0 : index
    %13 = vector.load %arg3[%c0_11, %c5, %c0_12] : memref<1x9x32xf32, #tpu.memory_space<vmem>>, vector<1x1x32xf32>
    %14 = vector.shape_cast %13 : vector<1x1x32xf32> to vector<1x32xf32>
    %c0_13 = arith.constant 0 : index
    %c6 = arith.constant 6 : index
    %c0_14 = arith.constant 0 : index
    %15 = vector.load %arg3[%c0_13, %c6, %c0_14] : memref<1x9x32xf32, #tpu.memory_space<vmem>>, vector<1x1x32xf32>
    %16 = vector.shape_cast %15 : vector<1x1x32xf32> to vector<1x32xf32>
    %c0_15 = arith.constant 0 : index
    %c7 = arith.constant 7 : index
    %c0_16 = arith.constant 0 : index
    %17 = vector.load %arg3[%c0_15, %c7, %c0_16] : memref<1x9x32xf32, #tpu.memory_space<vmem>>, vector<1x1x32xf32>
    %18 = vector.shape_cast %17 : vector<1x1x32xf32> to vector<1x32xf32>
    %c0_17 = arith.constant 0 : index
    %c8 = arith.constant 8 : index
    %c0_18 = arith.constant 0 : index
    %19 = vector.load %arg3[%c0_17, %c8, %c0_18] : memref<1x9x32xf32, #tpu.memory_space<vmem>>, vector<1x1x32xf32>
    %20 = vector.shape_cast %19 : vector<1x1x32xf32> to vector<1x32xf32>
    %c0_19 = arith.constant 0 : index
    %c0_20 = arith.constant 0 : index
    %c0_21 = arith.constant 0 : index
    %21 = vector.load %arg10[%c0_19, %c0_20, %c0_21] : memref<2x8x32xf32, #tpu.memory_space<vmem>>, vector<1x8x32xf32>
    %22 = vector.shape_cast %21 : vector<1x8x32xf32> to vector<8x32xf32>
    %cst = arith.constant dense<0.000000e+00> : vector<8xf32>
    %23 = vector.multi_reduction <add>, %22, %cst [1] : vector<8x32xf32> to vector<8xf32>
    %24 = vector.shape_cast %23 : vector<8xf32> to vector<8x1xf32>
    %cst_22 = arith.constant 3.200000e+01 : f32
    %25 = vector.broadcast %cst_22 : f32 to vector<8x1xf32>
    %26 = arith.divf %24, %25 : vector<8x1xf32>
    %27 = vector.broadcast %26 : vector<8x1xf32> to vector<8x32xf32>
    %28 = arith.subf %22, %27 : vector<8x32xf32>
    %29 = arith.mulf %28, %28 : vector<8x32xf32>
    %cst_23 = arith.constant dense<0.000000e+00> : vector<8xf32>
    %30 = vector.multi_reduction <add>, %29, %cst_23 [1] : vector<8x32xf32> to vector<8xf32>
    %31 = vector.shape_cast %30 : vector<8xf32> to vector<8x1xf32>
    %cst_24 = arith.constant 3.200000e+01 : f32
    %32 = vector.broadcast %cst_24 : f32 to vector<8x1xf32>
    %33 = arith.divf %31, %32 : vector<8x1xf32>
    %34 = vector.broadcast %26 : vector<8x1xf32> to vector<8x32xf32>
    %35 = arith.subf %22, %34 : vector<8x32xf32>
    %cst_25 = arith.constant 9.99999997E-7 : f32
    %36 = vector.broadcast %cst_25 : f32 to vector<8x1xf32>
    %37 = arith.addf %33, %36 : vector<8x1xf32>
    %38 = math.rsqrt %37 : vector<8x1xf32>
    %39 = vector.broadcast %38 : vector<8x1xf32> to vector<8x32xf32>
    %40 = arith.mulf %35, %39 : vector<8x32xf32>
    %41 = vector.broadcast %4 : vector<1x32xf32> to vector<8x32xf32>
    %42 = arith.mulf %40, %41 : vector<8x32xf32>
    %43 = vector.broadcast %6 : vector<1x32xf32> to vector<8x32xf32>
    %44 = arith.addf %42, %43 : vector<8x32xf32>
    %45 = arith.truncf %44 : vector<8x32xf32> to vector<8x32xbf16>
    %c0_26 = arith.constant 0 : index
    %c0_27 = arith.constant 0 : index
    %c0_28 = arith.constant 0 : index
    %46 = vector.load %arg4[%c0_26, %c0_27, %c0_28] : memref<1x32x96xbf16, #tpu.memory_space<vmem>>, vector<1x32x96xbf16>
    %47 = vector.shape_cast %46 : vector<1x32x96xbf16> to vector<32x96xbf16>
    %cst_29 = arith.constant dense<0.000000e+00> : vector<8x96xf32>
    %48 = tpu.matmul %45, %47, %cst_29 {dimension_numbers = #tpu.dot_dimension_numbers<[1], [0], [0], [1], [0, 0, 1, 1], [], []>} : vector<8x32xbf16>, vector<32x96xbf16>, vector<8x96xf32> -> vector<8x96xf32>
    %49 = vector.extract_strided_slice %48 {offsets = [0, 0], sizes = [8, 32], strides = [1, 1]} : vector<8x96xf32> to vector<8x32xf32>
    %50 = vector.broadcast %8 : vector<1x32xf32> to vector<8x32xf32>
    %51 = arith.addf %49, %50 : vector<8x32xf32>
    %cst_30 = arith.constant 0.353553385 : f32
    %52 = vector.broadcast %cst_30 : f32 to vector<8x32xf32>
    %53 = arith.mulf %51, %52 : vector<8x32xf32>
    %54 = arith.truncf %53 : vector<8x32xf32> to vector<8x32xbf16>
    %55 = vector.extract_strided_slice %48 {offsets = [0, 32], sizes = [8, 32], strides = [1, 1]} : vector<8x96xf32> to vector<8x32xf32>
    %56 = vector.broadcast %10 : vector<1x32xf32> to vector<8x32xf32>
    %57 = arith.addf %55, %56 : vector<8x32xf32>
    %58 = arith.truncf %57 : vector<8x32xf32> to vector<8x32xbf16>
    %59 = vector.extract_strided_slice %48 {offsets = [0, 64], sizes = [8, 32], strides = [1, 1]} : vector<8x96xf32> to vector<8x32xf32>
    %60 = vector.broadcast %12 : vector<1x32xf32> to vector<8x32xf32>
    %61 = arith.addf %59, %60 : vector<8x32xf32>
    %62 = arith.truncf %61 : vector<8x32xf32> to vector<8x32xbf16>
    %63 = vector.extract_strided_slice %54 {offsets = [0, 0], sizes = [8, 8], strides = [1, 1]} : vector<8x32xbf16> to vector<8x8xbf16>
    %64 = vector.extract_strided_slice %58 {offsets = [0, 0], sizes = [8, 8], strides = [1, 1]} : vector<8x32xbf16> to vector<8x8xbf16>
    %cst_31 = arith.constant dense<0.000000e+00> : vector<8x8xf32>
    %65 = tpu.matmul %63, %64, %cst_31 {dimension_numbers = #tpu.dot_dimension_numbers<[1], [1], [0], [0], [0, 0, 1, 0], [], []>} : vector<8x8xbf16>, vector<8x8xbf16>, vector<8x8xf32> -> vector<8x8xf32>
    %cst_32 = arith.constant dense<0xFF800000> : vector<8xf32>
    %66 = vector.multi_reduction <maximumf>, %65, %cst_32 [1] : vector<8x8xf32> to vector<8xf32>
    %67 = vector.shape_cast %66 : vector<8xf32> to vector<8x1xf32>
    %68 = vector.broadcast %67 : vector<8x1xf32> to vector<8x8xf32>
    %69 = arith.subf %65, %68 : vector<8x8xf32>
    %70 = math.exp %69 : vector<8x8xf32>
    %cst_33 = arith.constant dense<0.000000e+00> : vector<8xf32>
    %71 = vector.multi_reduction <add>, %70, %cst_33 [1] : vector<8x8xf32> to vector<8xf32>
    %72 = vector.shape_cast %71 : vector<8xf32> to vector<8x1xf32>
    %73 = tpu.reciprocal %72 {approx = true} : vector<8x1xf32> -> vector<8x1xf32>
    %74 = vector.broadcast %73 : vector<8x1xf32> to vector<8x8xf32>
    %75 = arith.mulf %70, %74 : vector<8x8xf32>
    %76 = arith.truncf %75 : vector<8x8xf32> to vector<8x8xbf16>
    %77 = vector.extract_strided_slice %62 {offsets = [0, 0], sizes = [8, 8], strides = [1, 1]} : vector<8x32xbf16> to vector<8x8xbf16>
    %cst_34 = arith.constant dense<0.000000e+00> : vector<8x8xf32>
    %78 = tpu.matmul %76, %77, %cst_34 {dimension_numbers = #tpu.dot_dimension_numbers<[1], [0], [0], [1], [0, 0, 1, 1], [], []>} : vector<8x8xbf16>, vector<8x8xbf16>, vector<8x8xf32> -> vector<8x8xf32>
    %79 = arith.truncf %78 : vector<8x8xf32> to vector<8x8xbf16>
    %80 = vector.extract_strided_slice %54 {offsets = [0, 8], sizes = [8, 8], strides = [1, 1]} : vector<8x32xbf16> to vector<8x8xbf16>
    %81 = vector.extract_strided_slice %58 {offsets = [0, 8], sizes = [8, 8], strides = [1, 1]} : vector<8x32xbf16> to vector<8x8xbf16>
    %cst_35 = arith.constant dense<0.000000e+00> : vector<8x8xf32>
    %82 = tpu.matmul %80, %81, %cst_35 {dimension_numbers = #tpu.dot_dimension_numbers<[1], [1], [0], [0], [0, 0, 1, 0], [], []>} : vector<8x8xbf16>, vector<8x8xbf16>, vector<8x8xf32> -> vector<8x8xf32>
    %cst_36 = arith.constant dense<0xFF800000> : vector<8xf32>
    %83 = vector.multi_reduction <maximumf>, %82, %cst_36 [1] : vector<8x8xf32> to vector<8xf32>
    %84 = vector.shape_cast %83 : vector<8xf32> to vector<8x1xf32>
    %85 = vector.broadcast %84 : vector<8x1xf32> to vector<8x8xf32>
    %86 = arith.subf %82, %85 : vector<8x8xf32>
    %87 = math.exp %86 : vector<8x8xf32>
    %cst_37 = arith.constant dense<0.000000e+00> : vector<8xf32>
    %88 = vector.multi_reduction <add>, %87, %cst_37 [1] : vector<8x8xf32> to vector<8xf32>
    %89 = vector.shape_cast %88 : vector<8xf32> to vector<8x1xf32>
    %90 = tpu.reciprocal %89 {approx = true} : vector<8x1xf32> -> vector<8x1xf32>
    %91 = vector.broadcast %90 : vector<8x1xf32> to vector<8x8xf32>
    %92 = arith.mulf %87, %91 : vector<8x8xf32>
    %93 = arith.truncf %92 : vector<8x8xf32> to vector<8x8xbf16>
    %94 = vector.extract_strided_slice %62 {offsets = [0, 8], sizes = [8, 8], strides = [1, 1]} : vector<8x32xbf16> to vector<8x8xbf16>
    %cst_38 = arith.constant dense<0.000000e+00> : vector<8x8xf32>
    %95 = tpu.matmul %93, %94, %cst_38 {dimension_numbers = #tpu.dot_dimension_numbers<[1], [0], [0], [1], [0, 0, 1, 1], [], []>} : vector<8x8xbf16>, vector<8x8xbf16>, vector<8x8xf32> -> vector<8x8xf32>
    %96 = arith.truncf %95 : vector<8x8xf32> to vector<8x8xbf16>
    %97 = vector.extract_strided_slice %54 {offsets = [0, 16], sizes = [8, 8], strides = [1, 1]} : vector<8x32xbf16> to vector<8x8xbf16>
    %98 = vector.extract_strided_slice %58 {offsets = [0, 16], sizes = [8, 8], strides = [1, 1]} : vector<8x32xbf16> to vector<8x8xbf16>
    %cst_39 = arith.constant dense<0.000000e+00> : vector<8x8xf32>
    %99 = tpu.matmul %97, %98, %cst_39 {dimension_numbers = #tpu.dot_dimension_numbers<[1], [1], [0], [0], [0, 0, 1, 0], [], []>} : vector<8x8xbf16>, vector<8x8xbf16>, vector<8x8xf32> -> vector<8x8xf32>
    %cst_40 = arith.constant dense<0xFF800000> : vector<8xf32>
    %100 = vector.multi_reduction <maximumf>, %99, %cst_40 [1] : vector<8x8xf32> to vector<8xf32>
    %101 = vector.shape_cast %100 : vector<8xf32> to vector<8x1xf32>
    %102 = vector.broadcast %101 : vector<8x1xf32> to vector<8x8xf32>
    %103 = arith.subf %99, %102 : vector<8x8xf32>
    %104 = math.exp %103 : vector<8x8xf32>
    %cst_41 = arith.constant dense<0.000000e+00> : vector<8xf32>
    %105 = vector.multi_reduction <add>, %104, %cst_41 [1] : vector<8x8xf32> to vector<8xf32>
    %106 = vector.shape_cast %105 : vector<8xf32> to vector<8x1xf32>
    %107 = tpu.reciprocal %106 {approx = true} : vector<8x1xf32> -> vector<8x1xf32>
    %108 = vector.broadcast %107 : vector<8x1xf32> to vector<8x8xf32>
    %109 = arith.mulf %104, %108 : vector<8x8xf32>
    %110 = arith.truncf %109 : vector<8x8xf32> to vector<8x8xbf16>
    %111 = vector.extract_strided_slice %62 {offsets = [0, 16], sizes = [8, 8], strides = [1, 1]} : vector<8x32xbf16> to vector<8x8xbf16>
    %cst_42 = arith.constant dense<0.000000e+00> : vector<8x8xf32>
    %112 = tpu.matmul %110, %111, %cst_42 {dimension_numbers = #tpu.dot_dimension_numbers<[1], [0], [0], [1], [0, 0, 1, 1], [], []>} : vector<8x8xbf16>, vector<8x8xbf16>, vector<8x8xf32> -> vector<8x8xf32>
    %113 = arith.truncf %112 : vector<8x8xf32> to vector<8x8xbf16>
    %114 = vector.extract_strided_slice %54 {offsets = [0, 24], sizes = [8, 8], strides = [1, 1]} : vector<8x32xbf16> to vector<8x8xbf16>
    %115 = vector.extract_strided_slice %58 {offsets = [0, 24], sizes = [8, 8], strides = [1, 1]} : vector<8x32xbf16> to vector<8x8xbf16>
    %cst_43 = arith.constant dense<0.000000e+00> : vector<8x8xf32>
    %116 = tpu.matmul %114, %115, %cst_43 {dimension_numbers = #tpu.dot_dimension_numbers<[1], [1], [0], [0], [0, 0, 1, 0], [], []>} : vector<8x8xbf16>, vector<8x8xbf16>, vector<8x8xf32> -> vector<8x8xf32>
    %cst_44 = arith.constant dense<0xFF800000> : vector<8xf32>
    %117 = vector.multi_reduction <maximumf>, %116, %cst_44 [1] : vector<8x8xf32> to vector<8xf32>
    %118 = vector.shape_cast %117 : vector<8xf32> to vector<8x1xf32>
    %119 = vector.broadcast %118 : vector<8x1xf32> to vector<8x8xf32>
    %120 = arith.subf %116, %119 : vector<8x8xf32>
    %121 = math.exp %120 : vector<8x8xf32>
    %cst_45 = arith.constant dense<0.000000e+00> : vector<8xf32>
    %122 = vector.multi_reduction <add>, %121, %cst_45 [1] : vector<8x8xf32> to vector<8xf32>
    %123 = vector.shape_cast %122 : vector<8xf32> to vector<8x1xf32>
    %124 = tpu.reciprocal %123 {approx = true} : vector<8x1xf32> -> vector<8x1xf32>
    %125 = vector.broadcast %124 : vector<8x1xf32> to vector<8x8xf32>
    %126 = arith.mulf %121, %125 : vector<8x8xf32>
    %127 = arith.truncf %126 : vector<8x8xf32> to vector<8x8xbf16>
    %128 = vector.extract_strided_slice %62 {offsets = [0, 24], sizes = [8, 8], strides = [1, 1]} : vector<8x32xbf16> to vector<8x8xbf16>
    %cst_46 = arith.constant dense<0.000000e+00> : vector<8x8xf32>
    %129 = tpu.matmul %127, %128, %cst_46 {dimension_numbers = #tpu.dot_dimension_numbers<[1], [0], [0], [1], [0, 0, 1, 1], [], []>} : vector<8x8xbf16>, vector<8x8xbf16>, vector<8x8xf32> -> vector<8x8xf32>
    %130 = arith.truncf %129 : vector<8x8xf32> to vector<8x8xbf16>
    %131 = tpu.concatenate %79, %96, %113, %130 in 1 : vector<8x8xbf16>, vector<8x8xbf16>, vector<8x8xbf16>, vector<8x8xbf16> -> vector<8x32xbf16>
    %c0_47 = arith.constant 0 : index
    %c0_48 = arith.constant 0 : index
    %c0_49 = arith.constant 0 : index
    %132 = vector.load %arg5[%c0_47, %c0_48, %c0_49] : memref<1x32x32xbf16, #tpu.memory_space<vmem>>, vector<1x32x32xbf16>
    %133 = vector.shape_cast %132 : vector<1x32x32xbf16> to vector<32x32xbf16>
    %cst_50 = arith.constant dense<0.000000e+00> : vector<8x32xf32>
    %134 = tpu.matmul %131, %133, %cst_50 {dimension_numbers = #tpu.dot_dimension_numbers<[1], [0], [0], [1], [0, 0, 1, 1], [], []>} : vector<8x32xbf16>, vector<32x32xbf16>, vector<8x32xf32> -> vector<8x32xf32>
    %135 = vector.broadcast %14 : vector<1x32xf32> to vector<8x32xf32>
    %136 = arith.addf %134, %135 : vector<8x32xf32>
    %137 = arith.addf %22, %136 : vector<8x32xf32>
    %cst_51 = arith.constant dense<0.000000e+00> : vector<8xf32>
    %138 = vector.multi_reduction <add>, %137, %cst_51 [1] : vector<8x32xf32> to vector<8xf32>
    %139 = vector.shape_cast %138 : vector<8xf32> to vector<8x1xf32>
    %cst_52 = arith.constant 3.200000e+01 : f32
    %140 = vector.broadcast %cst_52 : f32 to vector<8x1xf32>
    %141 = arith.divf %139, %140 : vector<8x1xf32>
    %142 = vector.broadcast %141 : vector<8x1xf32> to vector<8x32xf32>
    %143 = arith.subf %137, %142 : vector<8x32xf32>
    %144 = arith.mulf %143, %143 : vector<8x32xf32>
    %cst_53 = arith.constant dense<0.000000e+00> : vector<8xf32>
    %145 = vector.multi_reduction <add>, %144, %cst_53 [1] : vector<8x32xf32> to vector<8xf32>
    %146 = vector.shape_cast %145 : vector<8xf32> to vector<8x1xf32>
    %cst_54 = arith.constant 3.200000e+01 : f32
    %147 = vector.broadcast %cst_54 : f32 to vector<8x1xf32>
    %148 = arith.divf %146, %147 : vector<8x1xf32>
    %149 = vector.broadcast %141 : vector<8x1xf32> to vector<8x32xf32>
    %150 = arith.subf %137, %149 : vector<8x32xf32>
    %cst_55 = arith.constant 9.99999997E-7 : f32
    %151 = vector.broadcast %cst_55 : f32 to vector<8x1xf32>
    %152 = arith.addf %148, %151 : vector<8x1xf32>
    %153 = math.rsqrt %152 : vector<8x1xf32>
    %154 = vector.broadcast %153 : vector<8x1xf32> to vector<8x32xf32>
    %155 = arith.mulf %150, %154 : vector<8x32xf32>
    %156 = vector.broadcast %16 : vector<1x32xf32> to vector<8x32xf32>
    %157 = arith.mulf %155, %156 : vector<8x32xf32>
    %158 = vector.broadcast %18 : vector<1x32xf32> to vector<8x32xf32>
    %159 = arith.addf %157, %158 : vector<8x32xf32>
    %160 = arith.truncf %159 : vector<8x32xf32> to vector<8x32xbf16>
    %cst_56 = arith.constant 0.000000e+00 : f32
    %161 = vector.broadcast %cst_56 : f32 to vector<8x32xf32>
    %c0_i32_57 = arith.constant 0 : i32
    %c64_i32 = arith.constant 64 : i32
    %162 = arith.muli %c0_i32_57, %c64_i32 : i32
    %c0_58 = arith.constant 0 : index
    %c0_59 = arith.constant 0 : index
    %163 = arith.index_cast %162 : i32 to index
    %164 = vector.load %arg6[%c0_58, %c0_59, %163] : memref<1x32x64xbf16, #tpu.memory_space<vmem>>, vector<1x32x64xbf16>
    %165 = vector.shape_cast %164 : vector<1x32x64xbf16> to vector<32x64xbf16>
    %cst_60 = arith.constant dense<0.000000e+00> : vector<8x64xf32>
    %166 = tpu.matmul %160, %165, %cst_60 {dimension_numbers = #tpu.dot_dimension_numbers<[1], [0], [0], [1], [0, 0, 1, 1], [], []>} : vector<8x32xbf16>, vector<32x64xbf16>, vector<8x64xf32> -> vector<8x64xf32>
    %c0_61 = arith.constant 0 : index
    %c0_62 = arith.constant 0 : index
    %167 = arith.index_cast %162 : i32 to index
    %168 = vector.load %arg7[%c0_61, %c0_62, %167] : memref<1x1x64xf32, #tpu.memory_space<vmem>>, vector<1x1x64xf32>
    %169 = vector.shape_cast %168 : vector<1x1x64xf32> to vector<1x64xf32>
    %170 = vector.broadcast %169 : vector<1x64xf32> to vector<8x64xf32>
    %171 = arith.addf %166, %170 : vector<8x64xf32>
    %cst_63 = arith.constant 5.000000e-01 : f32
    %172 = vector.broadcast %cst_63 : f32 to vector<8x64xf32>
    %173 = arith.mulf %172, %171 : vector<8x64xf32>
    %174 = arith.mulf %171, %171 : vector<8x64xf32>
    %175 = arith.mulf %174, %171 : vector<8x64xf32>
    %cst_64 = arith.constant 4.471500e-02 : f32
    %176 = vector.broadcast %cst_64 : f32 to vector<8x64xf32>
    %177 = arith.mulf %176, %175 : vector<8x64xf32>
    %178 = arith.addf %171, %177 : vector<8x64xf32>
    %cst_65 = arith.constant 0.797884583 : f32
    %179 = vector.broadcast %cst_65 : f32 to vector<8x64xf32>
    %180 = arith.mulf %179, %178 : vector<8x64xf32>
    %181 = math.tanh %180 : vector<8x64xf32>
    %cst_66 = arith.constant 1.000000e+00 : f32
    %182 = vector.broadcast %cst_66 : f32 to vector<8x64xf32>
    %183 = arith.addf %182, %181 : vector<8x64xf32>
    %184 = arith.mulf %173, %183 : vector<8x64xf32>
    %185 = arith.truncf %184 : vector<8x64xf32> to vector<8x64xbf16>
    %c0_67 = arith.constant 0 : index
    %186 = arith.index_cast %162 : i32 to index
    %c0_68 = arith.constant 0 : index
    %187 = vector.load %arg8[%c0_67, %186, %c0_68] : memref<1x64x32xbf16, #tpu.memory_space<vmem>>, vector<1x64x32xbf16>
    %188 = vector.shape_cast %187 : vector<1x64x32xbf16> to vector<64x32xbf16>
    %cst_69 = arith.constant dense<0.000000e+00> : vector<8x32xf32>
    %189 = tpu.matmul %185, %188, %cst_69 {dimension_numbers = #tpu.dot_dimension_numbers<[1], [0], [0], [1], [0, 0, 1, 1], [], []>} : vector<8x64xbf16>, vector<64x32xbf16>, vector<8x32xf32> -> vector<8x32xf32>
    %190 = arith.addf %161, %189 : vector<8x32xf32>
    %c1_i32 = arith.constant 1 : i32
    %191 = vector.broadcast %20 : vector<1x32xf32> to vector<8x32xf32>
    %192 = arith.addf %190, %191 : vector<8x32xf32>
    %193 = arith.addf %137, %192 : vector<8x32xf32>
    %c0_70 = arith.constant 0 : index
    %c0_71 = arith.constant 0 : index
    %c0_72 = arith.constant 0 : index
    %194 = vector.load %arg10[%c0_70, %c0_71, %c0_72] : memref<2x8x32xf32, #tpu.memory_space<vmem>>, vector<1x8x32xf32>
    %195 = vector.shape_cast %194 : vector<1x8x32xf32> to vector<8x32xf32>
    %196 = vector.shape_cast %193 : vector<8x32xf32> to vector<1x8x32xf32>
    tpu.vector_store %arg10[%c0_70, %c0_71, %c0_72], %196 {strides = array<i32>} : memref<2x8x32xf32, #tpu.memory_space<vmem>>, vector<1x8x32xf32>,
    %c1_73 = arith.constant 1 : index
    %c0_74 = arith.constant 0 : index
    %c0_75 = arith.constant 0 : index
    %197 = vector.load %arg10[%c1_73, %c0_74, %c0_75] : memref<2x8x32xf32, #tpu.memory_space<vmem>>, vector<1x8x32xf32>
    %198 = vector.shape_cast %197 : vector<1x8x32xf32> to vector<8x32xf32>
    %cst_76 = arith.constant dense<0.000000e+00> : vector<8xf32>
    %199 = vector.multi_reduction <add>, %198, %cst_76 [1] : vector<8x32xf32> to vector<8xf32>
    %200 = vector.shape_cast %199 : vector<8xf32> to vector<8x1xf32>
    %cst_77 = arith.constant 3.200000e+01 : f32
    %201 = vector.broadcast %cst_77 : f32 to vector<8x1xf32>
    %202 = arith.divf %200, %201 : vector<8x1xf32>
    %203 = vector.broadcast %202 : vector<8x1xf32> to vector<8x32xf32>
    %204 = arith.subf %198, %203 : vector<8x32xf32>
    %205 = arith.mulf %204, %204 : vector<8x32xf32>
    %cst_78 = arith.constant dense<0.000000e+00> : vector<8xf32>
    %206 = vector.multi_reduction <add>, %205, %cst_78 [1] : vector<8x32xf32> to vector<8xf32>
    %207 = vector.shape_cast %206 : vector<8xf32> to vector<8x1xf32>
    %cst_79 = arith.constant 3.200000e+01 : f32
    %208 = vector.broadcast %cst_79 : f32 to vector<8x1xf32>
    %209 = arith.divf %207, %208 : vector<8x1xf32>
    %210 = vector.broadcast %202 : vector<8x1xf32> to vector<8x32xf32>
    %211 = arith.subf %198, %210 : vector<8x32xf32>
    %cst_80 = arith.constant 9.99999997E-7 : f32
    %212 = vector.broadcast %cst_80 : f32 to vector<8x1xf32>
    %213 = arith.addf %209, %212 : vector<8x1xf32>
    %214 = math.rsqrt %213 : vector<8x1xf32>
    %215 = vector.broadcast %214 : vector<8x1xf32> to vector<8x32xf32>
    %216 = arith.mulf %211, %215 : vector<8x32xf32>
    %217 = vector.broadcast %4 : vector<1x32xf32> to vector<8x32xf32>
    %218 = arith.mulf %216, %217 : vector<8x32xf32>
    %219 = vector.broadcast %6 : vector<1x32xf32> to vector<8x32xf32>
    %220 = arith.addf %218, %219 : vector<8x32xf32>
    %221 = arith.truncf %220 : vector<8x32xf32> to vector<8x32xbf16>
    %c0_81 = arith.constant 0 : index
    %c0_82 = arith.constant 0 : index
    %c0_83 = arith.constant 0 : index
    %222 = vector.load %arg4[%c0_81, %c0_82, %c0_83] : memref<1x32x96xbf16, #tpu.memory_space<vmem>>, vector<1x32x96xbf16>
    %223 = vector.shape_cast %222 : vector<1x32x96xbf16> to vector<32x96xbf16>
    %cst_84 = arith.constant dense<0.000000e+00> : vector<8x96xf32>
    %224 = tpu.matmul %221, %223, %cst_84 {dimension_numbers = #tpu.dot_dimension_numbers<[1], [0], [0], [1], [0, 0, 1, 1], [], []>} : vector<8x32xbf16>, vector<32x96xbf16>, vector<8x96xf32> -> vector<8x96xf32>
    %225 = vector.extract_strided_slice %224 {offsets = [0, 0], sizes = [8, 32], strides = [1, 1]} : vector<8x96xf32> to vector<8x32xf32>
    %226 = vector.broadcast %8 : vector<1x32xf32> to vector<8x32xf32>
    %227 = arith.addf %225, %226 : vector<8x32xf32>
    %cst_85 = arith.constant 0.353553385 : f32
    %228 = vector.broadcast %cst_85 : f32 to vector<8x32xf32>
    %229 = arith.mulf %227, %228 : vector<8x32xf32>
    %230 = arith.truncf %229 : vector<8x32xf32> to vector<8x32xbf16>
    %231 = vector.extract_strided_slice %224 {offsets = [0, 32], sizes = [8, 32], strides = [1, 1]} : vector<8x96xf32> to vector<8x32xf32>
    %232 = vector.broadcast %10 : vector<1x32xf32> to vector<8x32xf32>
    %233 = arith.addf %231, %232 : vector<8x32xf32>
    %234 = arith.truncf %233 : vector<8x32xf32> to vector<8x32xbf16>
    %235 = vector.extract_strided_slice %224 {offsets = [0, 64], sizes = [8, 32], strides = [1, 1]} : vector<8x96xf32> to vector<8x32xf32>
    %236 = vector.broadcast %12 : vector<1x32xf32> to vector<8x32xf32>
    %237 = arith.addf %235, %236 : vector<8x32xf32>
    %238 = arith.truncf %237 : vector<8x32xf32> to vector<8x32xbf16>
    %239 = vector.extract_strided_slice %230 {offsets = [0, 0], sizes = [8, 8], strides = [1, 1]} : vector<8x32xbf16> to vector<8x8xbf16>
    %240 = vector.extract_strided_slice %234 {offsets = [0, 0], sizes = [8, 8], strides = [1, 1]} : vector<8x32xbf16> to vector<8x8xbf16>
    %cst_86 = arith.constant dense<0.000000e+00> : vector<8x8xf32>
    %241 = tpu.matmul %239, %240, %cst_86 {dimension_numbers = #tpu.dot_dimension_numbers<[1], [1], [0], [0], [0, 0, 1, 0], [], []>} : vector<8x8xbf16>, vector<8x8xbf16>, vector<8x8xf32> -> vector<8x8xf32>
    %cst_87 = arith.constant dense<0xFF800000> : vector<8xf32>
    %242 = vector.multi_reduction <maximumf>, %241, %cst_87 [1] : vector<8x8xf32> to vector<8xf32>
    %243 = vector.shape_cast %242 : vector<8xf32> to vector<8x1xf32>
    %244 = vector.broadcast %243 : vector<8x1xf32> to vector<8x8xf32>
    %245 = arith.subf %241, %244 : vector<8x8xf32>
    %246 = math.exp %245 : vector<8x8xf32>
    %cst_88 = arith.constant dense<0.000000e+00> : vector<8xf32>
    %247 = vector.multi_reduction <add>, %246, %cst_88 [1] : vector<8x8xf32> to vector<8xf32>
    %248 = vector.shape_cast %247 : vector<8xf32> to vector<8x1xf32>
    %249 = tpu.reciprocal %248 {approx = true} : vector<8x1xf32> -> vector<8x1xf32>
    %250 = vector.broadcast %249 : vector<8x1xf32> to vector<8x8xf32>
    %251 = arith.mulf %246, %250 : vector<8x8xf32>
    %252 = arith.truncf %251 : vector<8x8xf32> to vector<8x8xbf16>
    %253 = vector.extract_strided_slice %238 {offsets = [0, 0], sizes = [8, 8], strides = [1, 1]} : vector<8x32xbf16> to vector<8x8xbf16>
    %cst_89 = arith.constant dense<0.000000e+00> : vector<8x8xf32>
    %254 = tpu.matmul %252, %253, %cst_89 {dimension_numbers = #tpu.dot_dimension_numbers<[1], [0], [0], [1], [0, 0, 1, 1], [], []>} : vector<8x8xbf16>, vector<8x8xbf16>, vector<8x8xf32> -> vector<8x8xf32>
    %255 = arith.truncf %254 : vector<8x8xf32> to vector<8x8xbf16>
    %256 = vector.extract_strided_slice %230 {offsets = [0, 8], sizes = [8, 8], strides = [1, 1]} : vector<8x32xbf16> to vector<8x8xbf16>
    %257 = vector.extract_strided_slice %234 {offsets = [0, 8], sizes = [8, 8], strides = [1, 1]} : vector<8x32xbf16> to vector<8x8xbf16>
    %cst_90 = arith.constant dense<0.000000e+00> : vector<8x8xf32>
    %258 = tpu.matmul %256, %257, %cst_90 {dimension_numbers = #tpu.dot_dimension_numbers<[1], [1], [0], [0], [0, 0, 1, 0], [], []>} : vector<8x8xbf16>, vector<8x8xbf16>, vector<8x8xf32> -> vector<8x8xf32>
    %cst_91 = arith.constant dense<0xFF800000> : vector<8xf32>
    %259 = vector.multi_reduction <maximumf>, %258, %cst_91 [1] : vector<8x8xf32> to vector<8xf32>
    %260 = vector.shape_cast %259 : vector<8xf32> to vector<8x1xf32>
    %261 = vector.broadcast %260 : vector<8x1xf32> to vector<8x8xf32>
    %262 = arith.subf %258, %261 : vector<8x8xf32>
    %263 = math.exp %262 : vector<8x8xf32>
    %cst_92 = arith.constant dense<0.000000e+00> : vector<8xf32>
    %264 = vector.multi_reduction <add>, %263, %cst_92 [1] : vector<8x8xf32> to vector<8xf32>
    %265 = vector.shape_cast %264 : vector<8xf32> to vector<8x1xf32>
    %266 = tpu.reciprocal %265 {approx = true} : vector<8x1xf32> -> vector<8x1xf32>
    %267 = vector.broadcast %266 : vector<8x1xf32> to vector<8x8xf32>
    %268 = arith.mulf %263, %267 : vector<8x8xf32>
    %269 = arith.truncf %268 : vector<8x8xf32> to vector<8x8xbf16>
    %270 = vector.extract_strided_slice %238 {offsets = [0, 8], sizes = [8, 8], strides = [1, 1]} : vector<8x32xbf16> to vector<8x8xbf16>
    %cst_93 = arith.constant dense<0.000000e+00> : vector<8x8xf32>
    %271 = tpu.matmul %269, %270, %cst_93 {dimension_numbers = #tpu.dot_dimension_numbers<[1], [0], [0], [1], [0, 0, 1, 1], [], []>} : vector<8x8xbf16>, vector<8x8xbf16>, vector<8x8xf32> -> vector<8x8xf32>
    %272 = arith.truncf %271 : vector<8x8xf32> to vector<8x8xbf16>
    %273 = vector.extract_strided_slice %230 {offsets = [0, 16], sizes = [8, 8], strides = [1, 1]} : vector<8x32xbf16> to vector<8x8xbf16>
    %274 = vector.extract_strided_slice %234 {offsets = [0, 16], sizes = [8, 8], strides = [1, 1]} : vector<8x32xbf16> to vector<8x8xbf16>
    %cst_94 = arith.constant dense<0.000000e+00> : vector<8x8xf32>
    %275 = tpu.matmul %273, %274, %cst_94 {dimension_numbers = #tpu.dot_dimension_numbers<[1], [1], [0], [0], [0, 0, 1, 0], [], []>} : vector<8x8xbf16>, vector<8x8xbf16>, vector<8x8xf32> -> vector<8x8xf32>
    %cst_95 = arith.constant dense<0xFF800000> : vector<8xf32>
    %276 = vector.multi_reduction <maximumf>, %275, %cst_95 [1] : vector<8x8xf32> to vector<8xf32>
    %277 = vector.shape_cast %276 : vector<8xf32> to vector<8x1xf32>
    %278 = vector.broadcast %277 : vector<8x1xf32> to vector<8x8xf32>
    %279 = arith.subf %275, %278 : vector<8x8xf32>
    %280 = math.exp %279 : vector<8x8xf32>
    %cst_96 = arith.constant dense<0.000000e+00> : vector<8xf32>
    %281 = vector.multi_reduction <add>, %280, %cst_96 [1] : vector<8x8xf32> to vector<8xf32>
    %282 = vector.shape_cast %281 : vector<8xf32> to vector<8x1xf32>
    %283 = tpu.reciprocal %282 {approx = true} : vector<8x1xf32> -> vector<8x1xf32>
    %284 = vector.broadcast %283 : vector<8x1xf32> to vector<8x8xf32>
    %285 = arith.mulf %280, %284 : vector<8x8xf32>
    %286 = arith.truncf %285 : vector<8x8xf32> to vector<8x8xbf16>
    %287 = vector.extract_strided_slice %238 {offsets = [0, 16], sizes = [8, 8], strides = [1, 1]} : vector<8x32xbf16> to vector<8x8xbf16>
    %cst_97 = arith.constant dense<0.000000e+00> : vector<8x8xf32>
    %288 = tpu.matmul %286, %287, %cst_97 {dimension_numbers = #tpu.dot_dimension_numbers<[1], [0], [0], [1], [0, 0, 1, 1], [], []>} : vector<8x8xbf16>, vector<8x8xbf16>, vector<8x8xf32> -> vector<8x8xf32>
    %289 = arith.truncf %288 : vector<8x8xf32> to vector<8x8xbf16>
    %290 = vector.extract_strided_slice %230 {offsets = [0, 24], sizes = [8, 8], strides = [1, 1]} : vector<8x32xbf16> to vector<8x8xbf16>
    %291 = vector.extract_strided_slice %234 {offsets = [0, 24], sizes = [8, 8], strides = [1, 1]} : vector<8x32xbf16> to vector<8x8xbf16>
    %cst_98 = arith.constant dense<0.000000e+00> : vector<8x8xf32>
    %292 = tpu.matmul %290, %291, %cst_98 {dimension_numbers = #tpu.dot_dimension_numbers<[1], [1], [0], [0], [0, 0, 1, 0], [], []>} : vector<8x8xbf16>, vector<8x8xbf16>, vector<8x8xf32> -> vector<8x8xf32>
    %cst_99 = arith.constant dense<0xFF800000> : vector<8xf32>
    %293 = vector.multi_reduction <maximumf>, %292, %cst_99 [1] : vector<8x8xf32> to vector<8xf32>
    %294 = vector.shape_cast %293 : vector<8xf32> to vector<8x1xf32>
    %295 = vector.broadcast %294 : vector<8x1xf32> to vector<8x8xf32>
    %296 = arith.subf %292, %295 : vector<8x8xf32>
    %297 = math.exp %296 : vector<8x8xf32>
    %cst_100 = arith.constant dense<0.000000e+00> : vector<8xf32>
    %298 = vector.multi_reduction <add>, %297, %cst_100 [1] : vector<8x8xf32> to vector<8xf32>
    %299 = vector.shape_cast %298 : vector<8xf32> to vector<8x1xf32>
    %300 = tpu.reciprocal %299 {approx = true} : vector<8x1xf32> -> vector<8x1xf32>
    %301 = vector.broadcast %300 : vector<8x1xf32> to vector<8x8xf32>
    %302 = arith.mulf %297, %301 : vector<8x8xf32>
    %303 = arith.truncf %302 : vector<8x8xf32> to vector<8x8xbf16>
    %304 = vector.extract_strided_slice %238 {offsets = [0, 24], sizes = [8, 8], strides = [1, 1]} : vector<8x32xbf16> to vector<8x8xbf16>
    %cst_101 = arith.constant dense<0.000000e+00> : vector<8x8xf32>
    %305 = tpu.matmul %303, %304, %cst_101 {dimension_numbers = #tpu.dot_dimension_numbers<[1], [0], [0], [1], [0, 0, 1, 1], [], []>} : vector<8x8xbf16>, vector<8x8xbf16>, vector<8x8xf32> -> vector<8x8xf32>
    %306 = arith.truncf %305 : vector<8x8xf32> to vector<8x8xbf16>
    %307 = tpu.concatenate %255, %272, %289, %306 in 1 : vector<8x8xbf16>, vector<8x8xbf16>, vector<8x8xbf16>, vector<8x8xbf16> -> vector<8x32xbf16>
    %c0_102 = arith.constant 0 : index
    %c0_103 = arith.constant 0 : index
    %c0_104 = arith.constant 0 : index
    %308 = vector.load %arg5[%c0_102, %c0_103, %c0_104] : memref<1x32x32xbf16, #tpu.memory_space<vmem>>, vector<1x32x32xbf16>
    %309 = vector.shape_cast %308 : vector<1x32x32xbf16> to vector<32x32xbf16>
    %cst_105 = arith.constant dense<0.000000e+00> : vector<8x32xf32>
    %310 = tpu.matmul %307, %309, %cst_105 {dimension_numbers = #tpu.dot_dimension_numbers<[1], [0], [0], [1], [0, 0, 1, 1], [], []>} : vector<8x32xbf16>, vector<32x32xbf16>, vector<8x32xf32> -> vector<8x32xf32>
    %311 = vector.broadcast %14 : vector<1x32xf32> to vector<8x32xf32>
    %312 = arith.addf %310, %311 : vector<8x32xf32>
    %313 = arith.addf %198, %312 : vector<8x32xf32>
    %cst_106 = arith.constant dense<0.000000e+00> : vector<8xf32>
    %314 = vector.multi_reduction <add>, %313, %cst_106 [1] : vector<8x32xf32> to vector<8xf32>
    %315 = vector.shape_cast %314 : vector<8xf32> to vector<8x1xf32>
    %cst_107 = arith.constant 3.200000e+01 : f32
    %316 = vector.broadcast %cst_107 : f32 to vector<8x1xf32>
    %317 = arith.divf %315, %316 : vector<8x1xf32>
    %318 = vector.broadcast %317 : vector<8x1xf32> to vector<8x32xf32>
    %319 = arith.subf %313, %318 : vector<8x32xf32>
    %320 = arith.mulf %319, %319 : vector<8x32xf32>
    %cst_108 = arith.constant dense<0.000000e+00> : vector<8xf32>
    %321 = vector.multi_reduction <add>, %320, %cst_108 [1] : vector<8x32xf32> to vector<8xf32>
    %322 = vector.shape_cast %321 : vector<8xf32> to vector<8x1xf32>
    %cst_109 = arith.constant 3.200000e+01 : f32
    %323 = vector.broadcast %cst_109 : f32 to vector<8x1xf32>
    %324 = arith.divf %322, %323 : vector<8x1xf32>
    %325 = vector.broadcast %317 : vector<8x1xf32> to vector<8x32xf32>
    %326 = arith.subf %313, %325 : vector<8x32xf32>
    %cst_110 = arith.constant 9.99999997E-7 : f32
    %327 = vector.broadcast %cst_110 : f32 to vector<8x1xf32>
    %328 = arith.addf %324, %327 : vector<8x1xf32>
    %329 = math.rsqrt %328 : vector<8x1xf32>
    %330 = vector.broadcast %329 : vector<8x1xf32> to vector<8x32xf32>
    %331 = arith.mulf %326, %330 : vector<8x32xf32>
    %332 = vector.broadcast %16 : vector<1x32xf32> to vector<8x32xf32>
    %333 = arith.mulf %331, %332 : vector<8x32xf32>
    %334 = vector.broadcast %18 : vector<1x32xf32> to vector<8x32xf32>
    %335 = arith.addf %333, %334 : vector<8x32xf32>
    %336 = arith.truncf %335 : vector<8x32xf32> to vector<8x32xbf16>
    %cst_111 = arith.constant 0.000000e+00 : f32
    %337 = vector.broadcast %cst_111 : f32 to vector<8x32xf32>
    %c0_i32_112 = arith.constant 0 : i32
    %c64_i32_113 = arith.constant 64 : i32
    %338 = arith.muli %c0_i32_112, %c64_i32_113 : i32
    %c0_114 = arith.constant 0 : index
    %c0_115 = arith.constant 0 : index
    %339 = arith.index_cast %338 : i32 to index
    %340 = vector.load %arg6[%c0_114, %c0_115, %339] : memref<1x32x64xbf16, #tpu.memory_space<vmem>>, vector<1x32x64xbf16>
    %341 = vector.shape_cast %340 : vector<1x32x64xbf16> to vector<32x64xbf16>
    %cst_116 = arith.constant dense<0.000000e+00> : vector<8x64xf32>
    %342 = tpu.matmul %336, %341, %cst_116 {dimension_numbers = #tpu.dot_dimension_numbers<[1], [0], [0], [1], [0, 0, 1, 1], [], []>} : vector<8x32xbf16>, vector<32x64xbf16>, vector<8x64xf32> -> vector<8x64xf32>
    %c0_117 = arith.constant 0 : index
    %c0_118 = arith.constant 0 : index
    %343 = arith.index_cast %338 : i32 to index
    %344 = vector.load %arg7[%c0_117, %c0_118, %343] : memref<1x1x64xf32, #tpu.memory_space<vmem>>, vector<1x1x64xf32>
    %345 = vector.shape_cast %344 : vector<1x1x64xf32> to vector<1x64xf32>
    %346 = vector.broadcast %345 : vector<1x64xf32> to vector<8x64xf32>
    %347 = arith.addf %342, %346 : vector<8x64xf32>
    %cst_119 = arith.constant 5.000000e-01 : f32
    %348 = vector.broadcast %cst_119 : f32 to vector<8x64xf32>
    %349 = arith.mulf %348, %347 : vector<8x64xf32>
    %350 = arith.mulf %347, %347 : vector<8x64xf32>
    %351 = arith.mulf %350, %347 : vector<8x64xf32>
    %cst_120 = arith.constant 4.471500e-02 : f32
    %352 = vector.broadcast %cst_120 : f32 to vector<8x64xf32>
    %353 = arith.mulf %352, %351 : vector<8x64xf32>
    %354 = arith.addf %347, %353 : vector<8x64xf32>
    %cst_121 = arith.constant 0.797884583 : f32
    %355 = vector.broadcast %cst_121 : f32 to vector<8x64xf32>
    %356 = arith.mulf %355, %354 : vector<8x64xf32>
    %357 = math.tanh %356 : vector<8x64xf32>
    %cst_122 = arith.constant 1.000000e+00 : f32
    %358 = vector.broadcast %cst_122 : f32 to vector<8x64xf32>
    %359 = arith.addf %358, %357 : vector<8x64xf32>
    %360 = arith.mulf %349, %359 : vector<8x64xf32>
    %361 = arith.truncf %360 : vector<8x64xf32> to vector<8x64xbf16>
    %c0_123 = arith.constant 0 : index
    %362 = arith.index_cast %338 : i32 to index
    %c0_124 = arith.constant 0 : index
    %363 = vector.load %arg8[%c0_123, %362, %c0_124] : memref<1x64x32xbf16, #tpu.memory_space<vmem>>, vector<1x64x32xbf16>
    %364 = vector.shape_cast %363 : vector<1x64x32xbf16> to vector<64x32xbf16>
    %cst_125 = arith.constant dense<0.000000e+00> : vector<8x32xf32>
    %365 = tpu.matmul %361, %364, %cst_125 {dimension_numbers = #tpu.dot_dimension_numbers<[1], [0], [0], [1], [0, 0, 1, 1], [], []>} : vector<8x64xbf16>, vector<64x32xbf16>, vector<8x32xf32> -> vector<8x32xf32>
    %366 = arith.addf %337, %365 : vector<8x32xf32>
    %c1_i32_126 = arith.constant 1 : i32
    %367 = vector.broadcast %20 : vector<1x32xf32> to vector<8x32xf32>
    %368 = arith.addf %366, %367 : vector<8x32xf32>
    %369 = arith.addf %313, %368 : vector<8x32xf32>
    %c1_127 = arith.constant 1 : index
    %c0_128 = arith.constant 0 : index
    %c0_129 = arith.constant 0 : index
    %370 = vector.load %arg10[%c1_127, %c0_128, %c0_129] : memref<2x8x32xf32, #tpu.memory_space<vmem>>, vector<1x8x32xf32>
    %371 = vector.shape_cast %370 : vector<1x8x32xf32> to vector<8x32xf32>
    %372 = vector.shape_cast %369 : vector<8x32xf32> to vector<1x8x32xf32>
    tpu.vector_store %arg10[%c1_127, %c0_128, %c0_129], %372 {strides = array<i32>} : memref<2x8x32xf32, #tpu.memory_space<vmem>>, vector<1x8x32xf32>,
    %c2_i32 = arith.constant 2 : i32
    %373 = arith.cmpi eq, %arg1, %c2_i32 : i32
    %374 = arith.extui %373 : i1 to i32
    %c0_i32_130 = arith.constant 0 : i32
    %375 = arith.cmpi ne, %374, %c0_i32_130 : i32
    scf.if %375 {
      %c0_131 = arith.constant 0 : index
      %c0_132 = arith.constant 0 : index
      %c0_133 = arith.constant 0 : index
      %376 = vector.load %arg10[%c0_131, %c0_132, %c0_133] : memref<2x8x32xf32, #tpu.memory_space<vmem>>, vector<2x8x32xf32>
      %c0_134 = arith.constant 0 : index
      %c0_135 = arith.constant 0 : index
      %c0_136 = arith.constant 0 : index
      %377 = vector.load %arg9[%c0_134, %c0_135, %c0_136] : memref<2x8x32xf32, #tpu.memory_space<vmem>>, vector<2x8x32xf32>
      tpu.vector_store %arg9[%c0_134, %c0_135, %c0_136], %376 {strides = array<i32>} : memref<2x8x32xf32, #tpu.memory_space<vmem>>, vector<2x8x32xf32>,
    } else {
    }
    return
  }
  func.func @transform_0(%arg0: i32, %arg1: i32) -> (i32, i32, i32) {
    %c0_i32 = arith.constant 0 : i32
    %c0_i32_0 = arith.constant 0 : i32
    %c0_i32_1 = arith.constant 0 : i32
    return %arg0, %c0_i32, %c0_i32_0 : i32, i32, i32
  }
  func.func @transform_1(%arg0: i32, %arg1: i32) -> (i32, i32, i32) {
    %c0_i32 = arith.constant 0 : i32
    %c0_i32_0 = arith.constant 0 : i32
    %c0_i32_1 = arith.constant 0 : i32
    return %arg1, %c0_i32, %c0_i32_0 : i32, i32, i32
  }
  func.func @transform_2(%arg0: i32, %arg1: i32) -> (i32, i32, i32) {
    %c0_i32 = arith.constant 0 : i32
    %c0_i32_0 = arith.constant 0 : i32
    %c0_i32_1 = arith.constant 0 : i32
    return %arg1, %c0_i32, %c0_i32_0 : i32, i32, i32
  }
  func.func @transform_3(%arg0: i32, %arg1: i32) -> (i32, i32, i32) {
    %c0_i32 = arith.constant 0 : i32
    %c0_i32_0 = arith.constant 0 : i32
    %c0_i32_1 = arith.constant 0 : i32
    return %arg1, %c0_i32, %c0_i32_0 : i32, i32, i32
  }
  func.func @transform_4(%arg0: i32, %arg1: i32) -> (i32, i32, i32) {
    %c0_i32 = arith.constant 0 : i32
    %c0_i32_0 = arith.constant 0 : i32
    %c0_i32_1 = arith.constant 0 : i32
    return %arg1, %c0_i32, %c0_i32_0 : i32, i32, i32
  }
  func.func @transform_5(%arg0: i32, %arg1: i32) -> (i32, i32, i32) {
    %c0_i32 = arith.constant 0 : i32
    %c0_i32_0 = arith.constant 0 : i32
    %c0_i32_1 = arith.constant 0 : i32
    return %arg1, %c0_i32, %c0_i32_0 : i32, i32, i32
  }
  func.func @transform_6(%arg0: i32, %arg1: i32) -> (i32, i32, i32) {
    %c0_i32 = arith.constant 0 : i32
    %c0_i32_0 = arith.constant 0 : i32
    %c0_i32_1 = arith.constant 0 : i32
    return %arg1, %c0_i32, %c0_i32_0 : i32, i32, i32
  }
  func.func @transform_7(%arg0: i32, %arg1: i32) -> (i32, i32, i32) {
    %c0_i32 = arith.constant 0 : i32
    %c0_i32_0 = arith.constant 0 : i32
    %c0_i32_1 = arith.constant 0 : i32
    return %arg0, %c0_i32, %c0_i32_0 : i32, i32, i32
  }
}

</mosaic_0001>

<bundles_post_ra>
// kernel: tpu_custom_call.1
= control target key start
LH: loop header
LB: loop body
LE: loop exit
PB: predicated region body
PF: predicated region fallthrough
CT: control target
= control target key end

     0   :  { %s3271_s0 = inlined_call_operand.vmem [shape: f32[4,8,32], index: 0, kind: input, shape index: {}]   ;;  %s3272_s1 = inlined_call_operand.vmem [shape: f32[3,9,32], index: 1, kind: input, shape index: {}]   ;;  %s3273_s2 = inlined_call_operand.vmem [shape: bf16[3,32,96], index: 2, kind: input, shape index: {}]   ;;  %s3274_s3 = inlined_call_operand.vmem [shape: bf16[3,32,32], index: 3, kind: input, shape index: {}]   ;;  %s3275_s4 = inlined_call_operand.vmem [shape: bf16[3,32,64], index: 4, kind: input, shape index: {}]   ;;  %s3276_s5 = inlined_call_operand.vmem [shape: f32[3,1,64], index: 5, kind: input, shape index: {}]   ;;  %s3277_s6 = inlined_call_operand.vmem [shape: bf16[3,64,32], index: 6, kind: input, shape index: {}]   ;;  %s3278_s7 = inlined_call_operand.hbm [shape: f32[4,8,32], index: 7, kind: output, shape index: {}]  }
   0x1   :  { %3289 = sst [smem:[#allocation14_spill]] %s3271_s0 }
   0x2   :  { %3290 = sst [smem:[#allocation15_spill]] %s3272_s1 }
   0x3   :  { %12 = vsyncpa [#allocation4], 0 }
   0x4   :  { %14 = vsyncpa [#allocation4 + $0x1], 0  ;;  %s2805_s24 = smov 0   ;;  %s2807_s25 = smov 0  }
   0x5   :  { %s2809_s26 = smov 0   ;;  %s2811_s27 = smov 0  }
   0x6   :  { %s2813_s28 = smov 0   ;;  %s2815_s29 = smov 0  }
   0x7   :  { %s2817_s30 = smov 0   ;;  %s2819_s8 = smov 0  }
   0x8 LB: > { %3291 = sst [smem:[#allocation6_spill]] %s2716_s24  ;;  %s2185_s9 = sadd.s32 4294967295, %s2744_s8   ;;  %s2744_s8 = sphi %s2819_s8, %s20_s8   ;;  %s2740_s30 = sphi %s2817_s30, %s3314_s30   ;;  %s2736_s29 = sphi %s2815_s29, %s3313_s29   ;;  %s2732_s28 = sphi %s2813_s28, %s3312_s28   ;;  %s2728_s27 = sphi %s2811_s27, %s3311_s27   ;;  %s2724_s26 = sphi %s2809_s26, %s3310_s26   ;;  %s2720_s25 = sphi %s2807_s25, %s3316_s25   ;;  %s2716_s24 = sphi %s2805_s24, %s3315_s24  }
   0x9   : > { %3292 = sst [smem:[#allocation7_spill]] %s2724_s26  ;;  %s2186_s10 = sadd.s32 4294967294, %s2744_s8  }
   0xa   : > { %3293 = sst [smem:[#allocation8_spill]] %s2736_s29  ;;  %s29_s11 = sadd.s32 1, %s2736_s29 }
   0xb   : > { %3294 = sst [smem:[#allocation9_spill]] %s2740_s30  ;;  %p30_p0 = scmp.ge.s32.totalorder %s29_s11, 3 }
   0xc   : > { %s32_s12 = sadd.s32 1, %s2740_s30  ;;  %p231_p1 = scmp.ne.s32.totalorder %s2724_s26, %s2720_s25 }
   0xd   : > { %p232_p2 = scmp.eq.s32.totalorder %s2185_s9, 5  ;;  %s3318_s11 = smov (%p30_p0, %s29_s11), 0 }
   0xe   : > { %3295 = sst [smem:[#allocation10_spill]] %s3318_s11  ;;  %s3320_s12 = smov (!%p30_p0, %s32_s12), %s2740_s30 }
   0xf   : > { %p2854_p3 = por %p232_p2, %p231_p1  ;;  %p237_p4 = scmp.ne.s32.totalorder %s2720_s25, %s2716_s24 }
  0x10   : > { %p34_p5 = scmp.ge.s32.totalorder %s3320_s12, 2  ;;  %p238_p6 = scmp.eq.s32.totalorder %s2186_s10, 5 }
  0x11   : > { %p2189_p7 = scmp.ge.s32.totalorder %s2744_s8, 1  ;;  %p311_p8 = scmp.lt.s32.totalorder %s2744_s8, 7 }
  0x12   : > { %s3322_s12 = smov (%p34_p5, %s3320_s12), 0  ;;  %p2864_p9 = por %p238_p6, %p237_p4 }
  0x13   : > { %3297 = sst [smem:[#allocation11_spill]] %s3322_s12  ;;  %p312_p10 = pnand %p2189_p7, %p311_p8 }
  0x14   : > { %s3298_s14 = scalar_select %p2864_p9, 1, 0 }
  0x15   : > { %s218_s15 = ssub.s32 %s2740_s30, %s3322_s12  ;;  %s221_s16 = sadd.s32 1, %s2724_s26 }
  0x16   : > { %3299 = sst [smem:[#allocation12_spill]] %s3298_s14  ;;  %p219_p11 = scmp.eq.s32.totalorder %s218_s15, 0 }
  0x17   : > { %315 = sbr.rel (%p312_p10) target bundleno = 4214 (0x1076), region = 48  ;;  %s3280_s18 = sand.u32 (!%p312_p10), 1, %s2720_s25  }
  0x18   : > { %s2872_s17 = scalar_select %p219_p11, %s2724_s26, %s221_s16  }
  0x19   : > { %s2191_s19 = sshll.u32 (!%p312_p10), %s2732_s28, 1  ;;  %s2190_s20 = sshll.u32 (!%p312_p10), %s3280_s18, 4 }
  0x1a   : > { %3300 = sst [smem:[#allocation13_spill]] %s2872_s17  ;;  %p372_p12 = scmp.lt.s32.totalorder (!%p312_p10), %s2191_s19, 3 }
  0x1b   : > { %p377_p13 = scmp.lt.s32.totalorder (!%p312_p10), %s2728_s27, 2  ;;  %s3301_s0 = sld [smem:[#allocation14_spill]] (!%p312_p10) }
  0x1c   : > { %s3324_s19 = smov (!%p372_p12, %s2191_s19), 3  ;;  %s3302_s1 = sld [smem:[#allocation15_spill]] }
  0x1d   : > { %s2880_s21 = scalar_select %p377_p13, %s2728_s27, 2 }
  0x1e   : > { %s2192_s22 = sshll.u32 %s3324_s19, 3  ;;  %s2916_s18 = scalar_lea.vmem [#allocation3], %s2190_s20 }
  0x1f   : > { %s2265_s15 = sshll.u32 %s2880_s21, 4  ;;  %s399_s12 = scalar_lea.vmem %s3276_s5, %s2880_s21 }
  0x20   : > { %s2894_s29 = scalar_lea.vmem %s3273_s2, %s2265_s15  ;;  %s2899_s14 = scalar_lea.vmem %s3274_s3, %s2265_s15 }
  0x21   : > { %s375_s10 = scalar_lea.vmem %s3301_s0, %s2192_s22  ;;  %s2904_s22 = scalar_lea.vmem %s3275_s4, %s2265_s15 }
  0x22   : > { %s2889_s11 = scalar_lea.vmem %s3302_s1, %s2265_s15  ;;  %s2269_s16 = sshll.u32 %s2880_s21, 5 }
  0x23   : > { %s2914_s30 = scalar_lea.vmem %s3277_s6, %s2269_s16  ;;  %p2203_p0 = scmp.ne.s32.totalorder %s2728_s27, 0 }
  0x25   : > { %410 = sbr.rel (%p2203_p0) target bundleno = 44 (0x2c), region = 52 }
  0x2a   : > { %v411_v0 = vld [vmem:[%s375_s10] sm:$0xff]  ;;  %vm413_vm0 = vcmask 261120   ;;  %v412_v1 = vld [vmem:[%s375_s10 + $0x8] sm:$0xff] }
  0x2b   : > { %414 = vst.msk [vmem:[#allocation2] sm:$0xff] %vm413_vm0, %v411_v0  ;;  %415 = vst.msk [vmem:[#allocation2 + $0x8] sm:$0xff] %vm413_vm0, %v412_v1 }
  0x2c PF: > { %vm426_vm1 = vcmask 261120   ;;  %v2588_v9 = vld [vmem:[%s2894_s29 + $0x8] sm:$0xff]   ;;  %v2746_v10 = vmov 0.0   ;;  %vm2747_vm2 = vmmov 0   ;;  %v2589_v11 = vld [vmem:[%s2894_s29] sm:$0xff]   ;;  %s2748_s0 = smov 32  }
  0x2d   : > { %2331 = vmatprep.subr.bf16.mxu1 %v2746_v10  ;;  %2335 = vmatprep.mubr.msk.bf16.mxu1 %vm2747_vm2, %v2746_v10  ;;  %v2210_v12 = vld [vmem:[%s2889_s11 + $0x3] ss:$0 sm:$0xff]  ;;  %v2937_v17 = vld [vmem:[%s2889_s11] ss:$0 sm:$0xff]  ;;  %v2940_v19 = vld [vmem:[%s2889_s11 + $0x1] ss:$0 sm:$0xff] }
  0x2e   : > { %2332 = vmatpush3.bf16.msra.mxu1 %v2588_v9  ;;  %2345 = vmatprep.subr.bf16.mxu0 %v2746_v10  ;;  %v2950_v24 = vld [vmem:[%s2889_s11 + $0x2] ss:$0 sm:$0xff]  ;;  %s2749_s1 = smov 88   ;;  %s2750_s24 = smov 96   ;;  %vm541_vm3 = vcmask 64512   ;;  %vm606_vm4 = vcmask 1043456  }
  0x2f   : > { %2333 = vmatprep.subr.bf16.mxu1 %v2746_v10  ;;  %2347 = vmatprep.mubr.msk.bf16.mxu0 %vm2747_vm2, %v2746_v10  ;;  %s2751_s26 = smov 80   ;;  %s2752_s17 = smov 120   ;;  %v2211_v1 = vld [vmem:[%s2889_s11 + $0x4] ss:$0 sm:$0xff]  ;;  %vm997_vm5 = vcmask 130048   ;;  %vm1000_vm6 = vcmask 195584  }
  0x30   : > { %523 = vrot.lane.b32.xlu1 %v2210_v12, %s2748_s0  ;;  %s2753_s20 = smov 112   ;;  %s2754_s10 = smov 72   ;;  %vm1202_vm7 = vcmask 523264  }
  0x31   : > { %s2755_s15 = smov 104   ;;  %s2756_s19 = smov 64  }
  0x32   : > { %v2919_v2 = vld [vmem:[#allocation2] sm:$0xff]  ;;  %2334 = vmatpush3.bf16.msra.mxu1 %v2589_v11  ;;  %s2757_s23 = smov 56   ;;  %s3287_s9 = smov 48  }
  0x33   : > { %v427_v3 = vsel %vm426_vm1, %v2919_v2, 0.0  ;;  %2339 = vmatprep.subr.bf16.mxu1 %v2746_v10  ;;  %s3286_s16 = smov 40   ;;  %s2760_s0 = smov 8  }
  0x34   : > { %428 = vadd.xlane.f32.xlu0 %v427_v3  ;;  %s3304_s21 = smov 40   ;;  %p2259_p1 = scmp.ne.s32.totalorder %s2728_s27, 2 }
  0xa2   : > { %v2947_v23 = vpop.permute.xlu1 %523 }
  0xbd   : > { %v429_v4 = vpop.xlane.xlu0 %428 }
  0xbe   : > { %v431_v5 = vmul.f32 0.03125, %v429_v4 }
  0xc0   : > { %v432_v6 = vsub.f32 %v2919_v2, %v431_v5 }
  0xc2   : > { %v433_v7 = vmul.f32 %v432_v6, %v432_v6 }
  0xc4   : > { %v434_v8 = vsel %vm426_vm1, %v433_v7, 0.0 }
  0xc5   : > { %435 = vadd.xlane.f32.xlu0 %v434_v8 }
 0x14e   : > { %v436_v13 = vpop.xlane.xlu0 %435 }
 0x14f   : > { %v437_v14 = vmul.f32 0.03125, %v436_v13 }
 0x151   : > { %v438_v15 = vadd.f32 1e-06, %v437_v14 }
 0x153   : > { %2608 = vrsqrt.f32 %v438_v15 }
 0x160   : > { %v2609_v16 = vpop.eup %2608 }
 0x161   : > { %v440_v18 = vmul.f32 %v2609_v16, %v432_v6 }
 0x163   : > { %v445_v20 = vmul.f32 %v2937_v17, %v440_v18 }
 0x165   : > { %v450_v21 = vadd.f32 %v2940_v19, %v445_v20 }
 0x167   : > { %v451_v22 = vpack.c.bf16 %v450_v21, %v450_v21 }
 0x169   : > { %2336 = vmatmul.mubr.msk.bf16.vlgmr.msra.gmra.mxu1 %vm426_vm1, %v451_v22 }
 0x16a   : > { %2341 = vmatprep.mubr.msk.bf16.mxu1 %vm2747_vm2, %v2746_v10 }
 0x229   : > { %v2952_v25 = vpop.f32.mrf.mxu1 }
 0x22a   : > { %v526_v26 = vadd.f32 %v2947_v23, %v2952_v25  ;;  %v515_v28 = vadd.f32 %v2950_v24, %v2952_v25 }
 0x22b   : > { %v2337_v27 = vpop.f32.mrf.mxu1 }
 0x22c   : > { %v527_v29 = vpack.c.bf16 %v526_v26, %v526_v26  ;;  %v516_v32 = vmul.f32 0.35355338, %v515_v28 }
 0x22d   : > { %v508_v30 = vpop.f32.mrf.mxu1 }
 0x22e   : > { %654 = vrot.lane.b32.xlu0 %v527_v29, %s2749_s1  ;;  %539 = vrot.lane.b32.xlu1 %v527_v29, %s2750_s24  ;;  %v517_v33 = vpack.c.bf16 %v516_v32, %v516_v32 }
 0x22f   : > { %v2338_v31 = vpop.f32.mrf.mxu1 }
 0x232   : > { %765 = vrot.lane.b32.xlu1 %v527_v29, %s2751_s26 }
 0x236   : > { %652 = vrot.lane.b32.xlu1 %v517_v33, %s2752_s17 }
 0x23a   : > { %763 = vrot.lane.b32.xlu1 %v517_v33, %s2753_s20 }
 0x23e   : > { %876 = vrot.lane.b32.xlu1 %v527_v29, %s2754_s10 }
 0x242   : > { %874 = vrot.lane.b32.xlu1 %v517_v33, %s2755_s15 }
 0x2a0   : > { %v540_v34 = vpop.permute.xlu1 %539  ;;  %v655_v37 = vpop.permute.xlu0 %654 }
 0x2a1   : > { %v546_v35 = vsel %vm541_vm3, %v540_v34, 0  ;;  %v660_v38 = vsel %vm541_vm3, %v655_v37, 0 }
 0x2a2   : > { %2340 = vmatpush3.bf16.xpose.msra.mxu1 %v546_v35 }
 0x2a3   : > { %2351 = vmatprep.subr.bf16.mxu1 %v2746_v10 }
 0x2a4   : > { %v766_v36 = vpop.permute.xlu1 %765 }
 0x2a5   : > { %v771_v41 = vsel %vm541_vm3, %v766_v36, 0 }
 0x2a8   : > { %v653_v39 = vpop.permute.xlu1 %652 }
 0x2a9   : > { %2342 = vmatmul.mubr.msk.bf16.vlgmr.msra.gmra.mxu1 %vm541_vm3, %v517_v33 }
 0x2aa   : > { %2352 = vmatpush3.bf16.xpose.msra.mxu1 %v660_v38  ;;  %2353 = vmatprep.mubr.msk.bf16.mxu1 %vm2747_vm2, %v2746_v10 }
 0x2ab   : > { %2363 = vmatprep.subr.bf16.mxu1 %v2746_v10 }
 0x2ac   : > { %v764_v40 = vpop.permute.xlu1 %763 }
 0x2b0   : > { %v877_v42 = vpop.permute.xlu1 %876 }
 0x2b1   : > { %2354 = vmatmul.mubr.msk.bf16.vlgmr.msra.gmra.mxu1 %vm541_vm3, %v653_v39  ;;  %v882_v43 = vsel %vm541_vm3, %v877_v42, 0 }
 0x2b2   : > { %2364 = vmatpush3.bf16.xpose.msra.mxu1 %v771_v41  ;;  %2365 = vmatprep.mubr.msk.bf16.mxu1 %vm2747_vm2, %v2746_v10 }
 0x2b3   : > { %2375 = vmatprep.subr.bf16.mxu1 %v2746_v10 }
 0x2b4   : > { %v875_v44 = vpop.permute.xlu1 %874 }
 0x2b9   : > { %2366 = vmatmul.mubr.msk.bf16.vlgmr.msra.gmra.mxu1 %vm541_vm3, %v764_v40 }
 0x2ba   : > { %2376 = vmatpush3.bf16.xpose.msra.mxu1 %v882_v43  ;;  %2377 = vmatprep.mubr.msk.bf16.mxu1 %vm2747_vm2, %v2746_v10 }
 0x2bb   : > { %2387 = vmatprep.subr.bf16.mxu1 %v2746_v10 }
 0x2c1   : > { %2378 = vmatmul.mubr.msk.bf16.vlgmr.msra.gmra.mxu1 %vm541_vm3, %v875_v44 }
 0x2c2   : > { %2391 = vmatprep.mubr.msk.bf16.mxu1 %vm2747_vm2, %v2746_v10 }
 0x369   : > { %v582_v45 = vpop.f32.mrf.mxu1 }
 0x36a   : > { %v588_v46 = vsel %vm541_vm3, %v582_v45, -inf }
 0x36b   : > { %589 = vmax.xlane.f32.xlu1 %v588_v46  ;;  %v2343_v47 = vpop.f32.mrf.mxu1 }
 0x36d   : > { %v585_v48 = vpop.f32.mrf.mxu1 }
 0x36f   : > { %v2344_v49 = vpop.f32.mrf.mxu1 }
 0x371   : > { %v696_v50 = vpop.f32.mrf.mxu1 }
 0x372   : > { %v702_v51 = vsel %vm541_vm3, %v696_v50, -inf }
 0x373   : > { %703 = vmax.xlane.f32.xlu0 %v702_v51  ;;  %v2355_v52 = vpop.f32.mrf.mxu1 }
 0x375   : > { %v699_v53 = vpop.f32.mrf.mxu1 }
 0x377   : > { %v2356_v54 = vpop.f32.mrf.mxu1 }
 0x379   : > { %v807_v55 = vpop.f32.mrf.mxu1 }
 0x37a   : > { %v813_v56 = vsel %vm541_vm3, %v807_v55, -inf }
 0x37b   : > { %814 = vmax.xlane.f32.xlu0 %v813_v56  ;;  %v2367_v57 = vpop.f32.mrf.mxu1 }
 0x37d   : > { %v810_v58 = vpop.f32.mrf.mxu1 }
 0x37f   : > { %v2368_v59 = vpop.f32.mrf.mxu1 }
 0x380   : > { %v2590_v59 = vld [vmem:[%s2899_s14 + $0x8] sm:$0xff]  }
 0x381   : > { %v918_v60 = vpop.f32.mrf.mxu1  ;;  %2388 = vmatpush3.bf16.msra.mxu1 %v2590_v59 }
 0x382   : > { %v924_v61 = vsel %vm541_vm3, %v918_v60, -inf  ;;  %2389 = vmatprep.subr.bf16.mxu1 %v2746_v10 }
 0x383   : > { %925 = vmax.xlane.f32.xlu1 %v924_v61  ;;  %v2379_v62 = vpop.f32.mrf.mxu1  ;;  %v2591_v61 = vld [vmem:[%s2899_s14] sm:$0xff]  }
 0x385   : > { %v921_v63 = vpop.f32.mrf.mxu1  ;;  %2390 = vmatpush3.bf16.msra.mxu1 %v2591_v61  ;;  %v2594_v61 = vld [vmem:[%s2894_s29 + $0x8] sm:$0xff]  }
 0x386   : > { %2403 = vmatprep.subr.bf16.mxu1 %v2746_v10 }
 0x387   : > { %v2380_v0 = vpop.f32.mrf.mxu1 }
 0x391   : > { %533 = vrot.lane.b32.xlu0 %v2211_v1, %s2756_s19 }
 0x3f4   : > { %v590_v3 = vpop.xlane.xlu1 %589 }
 0x3f5   : > { %v591_v4 = vsub.f32 %v582_v45, %v590_v3 }
 0x3f7   : > { %v592_v5 = vmul.f32 1.442695, %v591_v4 }
 0x3f9   : > { %2610 = vpow2.f32 %v592_v5 }
 0x3fc   : > { %v704_v6 = vpop.xlane.xlu0 %703 }
 0x3fd   : > { %v705_v7 = vsub.f32 %v696_v50, %v704_v6 }
 0x3ff   : > { %v706_v8 = vmul.f32 1.442695, %v705_v7 }
 0x401   : > { %2612 = vpow2.f32 %v706_v8 }
 0x404   : > { %v815_v9 = vpop.xlane.xlu0 %814 }
 0x405   : > { %v816_v11 = vsub.f32 %v807_v55, %v815_v9 }
 0x406   : > { %v2611_v12 = vpop.eup %2610 }
 0x407   : > { %v817_v13 = vmul.f32 1.442695, %v816_v11  ;;  %v594_v14 = vsel %vm541_vm3, %v2611_v12, 0.0 }
 0x408   : > { %v2992_v15 = vpop.permute.xlu0 %533  ;;  %595 = vadd.xlane.f32.xlu1 %v594_v14  ;;  %v3030_v14 = vld [vmem:[#allocation2 + $0x8] sm:$0xff] }
 0x409   : > { %2614 = vpow2.f32 %v817_v13  ;;  %v536_v16 = vadd.f32 %v2992_v15, %v2952_v25 }
 0x40b   : > { %v537_v18 = vpack.c.bf16 %v536_v16, %v536_v16  ;;  %v1250_v16 = vsel %vm426_vm1, %v3030_v14, 0.0 }
 0x40c   : > { %v926_v20 = vpop.xlane.xlu1 %925 }
 0x40d   : > { %v927_v21 = vsub.f32 %v918_v60, %v926_v20  ;;  %714 = vrot.lane.b32.xlu0 %v537_v18, %s2757_s23 }
 0x40e   : > { %v2613_v22 = vpop.eup %2612 }
 0x40f   : > { %v928_v26 = vmul.f32 1.442695, %v927_v21  ;;  %v708_v27 = vsel %vm541_vm3, %v2613_v22, 0.0 }
 0x410   : > { %709 = vadd.xlane.f32.xlu1 %v708_v27 }
 0x411   : > { %2616 = vpow2.f32 %v928_v26  ;;  %825 = vrot.lane.b32.xlu0 %v537_v18, %s3287_s9  ;;  %s3288_s9 = smov 24  }
 0x415   : > { %936 = vrot.lane.b32.xlu0 %v537_v18, %s3286_s16  ;;  %s2761_s16 = smov 16  }
 0x416   : > { %v2615_v28 = vpop.eup %2614 }
 0x417   : > { %v819_v25 = vsel %vm541_vm3, %v2615_v28, 0.0 }
 0x418   : > { %820 = vadd.xlane.f32.xlu1 %v819_v25 }
 0x41e   : > { %v2617_v29 = vpop.eup %2616 }
 0x41f   : > { %v930_v30 = vsel %vm541_vm3, %v2617_v29, 0.0 }
 0x420   : > { %931 = vadd.xlane.f32.xlu1 %v930_v30  ;;  %v3041_v30 = vld [vmem:[%s2889_s11 + $0x5] ss:$0 sm:$0xff] }
 0x431   : > { %601 = vrot.lane.b32.xlu1 %v537_v18, %s2756_s19 }
 0x47f   : > { %v715_v39 = vpop.permute.xlu0 %714 }
 0x480   : > { %v720_v42 = vsel %vm606_vm4, %v715_v39, 0 }
 0x483   : > { %v826_v44 = vpop.permute.xlu0 %825 }
 0x484   : > { %v831_v47 = vsel %vm606_vm4, %v826_v44, 0 }
 0x487   : > { %v937_v49 = vpop.permute.xlu0 %936 }
 0x488   : > { %v942_v52 = vsel %vm606_vm4, %v937_v49, 0 }
 0x491   : > { %v596_v31 = vpop.xlane.xlu1 %595 }
 0x492   : > { %2618 = vrcp.f32 %v596_v31 }
 0x499   : > { %v710_v32 = vpop.xlane.xlu1 %709 }
 0x49a   : > { %2620 = vrcp.f32 %v710_v32 }
 0x49f   : > { %v2619_v34 = vpop.eup %2618 }
 0x4a0   : > { %v598_v36 = vmul.f32 %v2619_v34, %v2611_v12 }
 0x4a1   : > { %v821_v33 = vpop.xlane.xlu1 %820 }
 0x4a2   : > { %2622 = vrcp.f32 %v821_v33  ;;  %v599_v40 = vpack.c.bf16 %v598_v36, %v598_v36 }
 0x4a7   : > { %v2621_v41 = vpop.eup %2620 }
 0x4a8   : > { %v712_v43 = vmul.f32 %v2621_v41, %v2613_v22 }
 0x4a9   : > { %v932_v35 = vpop.xlane.xlu1 %931 }
 0x4aa   : > { %2624 = vrcp.f32 %v932_v35  ;;  %v713_v45 = vpack.c.bf16 %v712_v43, %v712_v43 }
 0x4ad   : > { %v602_v37 = vpop.permute.xlu1 %601 }
 0x4ae   : > { %v608_v38 = vsel %vm606_vm4, %v602_v37, 0 }
 0x4af   : > { %2346 = vmatpush3.bf16.msra.mxu0 %v608_v38  ;;  %v2623_v46 = vpop.eup %2622 }
 0x4b0   : > { %2357 = vmatprep.subr.bf16.mxu0 %v2746_v10  ;;  %v823_v48 = vmul.f32 %v2623_v46, %v2615_v28  ;;  %v2593_v46 = vld [vmem:[%s2904_s22] sm:$0xff]  }
 0x4b2   : > { %2348 = vmatmul.mubr.msk.bf16.vlgmr.msra.gmra.mxu0 %vm541_vm3, %v599_v40  ;;  %v824_v50 = vpack.c.bf16 %v823_v48, %v823_v48 }
 0x4b3   : > { %2358 = vmatpush3.bf16.msra.mxu0 %v720_v42  ;;  %2359 = vmatprep.mubr.msk.bf16.mxu0 %vm2747_vm2, %v2746_v10 }
 0x4b4   : > { %2369 = vmatprep.subr.bf16.mxu0 %v2746_v10 }
 0x4b7   : > { %v2625_v51 = vpop.eup %2624 }
 0x4b8   : > { %v934_v53 = vmul.f32 %v2625_v51, %v2617_v29 }
 0x4ba   : > { %2360 = vmatmul.mubr.msk.bf16.vlgmr.msra.gmra.mxu0 %vm541_vm3, %v713_v45  ;;  %v935_v54 = vpack.c.bf16 %v934_v53, %v934_v53 }
 0x4bb   : > { %2370 = vmatpush3.bf16.msra.mxu0 %v831_v47  ;;  %2371 = vmatprep.mubr.msk.bf16.mxu0 %vm2747_vm2, %v2746_v10 }
 0x4bc   : > { %2381 = vmatprep.subr.bf16.mxu0 %v2746_v10 }
 0x4c2   : > { %2372 = vmatmul.mubr.msk.bf16.vlgmr.msra.gmra.mxu0 %vm541_vm3, %v824_v50 }
 0x4c3   : > { %2382 = vmatpush3.bf16.msra.mxu0 %v942_v52  ;;  %2383 = vmatprep.mubr.msk.bf16.mxu0 %vm2747_vm2, %v2746_v10 }
 0x4c4   : > { %2395 = vmatprep.subr.bf16.mxu0 %v2746_v10 }
 0x4ca   : > { %2384 = vmatmul.mubr.msk.bf16.vlgmr.msra.gmra.mxu0 %vm541_vm3, %v935_v54 }
 0x4cb   : > { %2399 = vmatprep.mubr.msk.bf16.mxu0 %vm2747_vm2, %v2746_v10 }
 0x572   : > { %v644_v55 = vpop.f32.mrf.mxu0 }
 0x573   : > { %v650_v20 = vpack.c.bf16 %v644_v55, %v644_v55  ;;  %v3058_v55 = vld [vmem:[%s2889_s11 + $0x6] ss:$0 sm:$0xff] }
 0x574   : > { %v2349_v56 = vpop.f32.mrf.mxu0 }
 0x576   : > { %v647_v57 = vpop.f32.mrf.mxu0 }
 0x577   : > { %v3061_v57 = vld [vmem:[%s2889_s11 + $0x7] ss:$0 sm:$0xff] }
 0x578   : > { %v2350_v58 = vpop.f32.mrf.mxu0 }
 0x57a   : > { %v756_v60 = vpop.f32.mrf.mxu0 }
 0x57b   : > { %v762_v62 = vpack.c.bf16 %v756_v60, %v756_v60 }
 0x57c   : > { %v2361_v63 = vpop.f32.mrf.mxu0 }
 0x57d   : > { %986 = vrot.lane.b32.xlu0 %v762_v62, %s2760_s0 }
 0x57e   : > { %v759_v0 = vpop.f32.mrf.mxu0 }
 0x57f   : > { %v2595_v0 = vld [vmem:[%s2894_s29] sm:$0xff]  }
 0x580   : > { %v2362_v1 = vpop.f32.mrf.mxu0 }
 0x582   : > { %v867_v3 = vpop.f32.mrf.mxu0 }
 0x583   : > { %v873_v4 = vpack.c.bf16 %v867_v3, %v867_v3 }
 0x584   : > { %v2373_v5 = vpop.f32.mrf.mxu0 }
 0x585   : > { %989 = vrot.lane.b32.xlu1 %v873_v4, %s2761_s16  ;;  %v2597_v4 = vld [vmem:[%s2914_s30 + $0x10] sm:$0xff]   ;;  %v2598_v5 = vld [vmem:[%s2914_s30 + $0x8] sm:$0xff]  }
 0x586   : > { %v870_v6 = vpop.f32.mrf.mxu0 }
 0x587   : > { %v3090_v6 = vld [vmem:[%s399_s12] ss:$0 sm:$0xff]  ;;  %s3305_s12 = smov 24  }
 0x588   : > { %v2374_v7 = vpop.f32.mrf.mxu0 }
 0x58a   : > { %v978_v8 = vpop.f32.mrf.mxu0 }
 0x58b   : > { %v984_v9 = vpack.c.bf16 %v978_v8, %v978_v8 }
 0x58c   : > { %v2385_v11 = vpop.f32.mrf.mxu0 }
 0x58d   : > { %992 = vrot.lane.b32.xlu0 %v984_v9, %s3288_s9 }
 0x58e   : > { %v981_v12 = vpop.f32.mrf.mxu0 }
 0x590   : > { %v2386_v13 = vpop.f32.mrf.mxu0 }
 0x5ac   : > { %1251 = vadd.xlane.f32.xlu0 %v1250_v16 }
 0x5ef   : > { %v987_v18 = vpop.permute.xlu0 %986 }
 0x5f0   : > { %v996_v22 = vsel %vm541_vm3, %v650_v20, %v987_v18 }
 0x5f7   : > { %v990_v21 = vpop.permute.xlu1 %989 }
 0x5f8   : > { %v999_v26 = vsel %vm997_vm5, %v996_v22, %v990_v21 }
 0x5ff   : > { %v993_v27 = vpop.permute.xlu0 %992 }
 0x600   : > { %v1002_v28 = vsel %vm1000_vm6, %v999_v26, %v993_v27 }
 0x601   : > { %2392 = vmatmul.mubr.msk.bf16.vlgmr.msra.gmra.mxu1 %vm426_vm1, %v1002_v28 }
 0x602   : > { %2411 = vmatprep.mubr.msk.bf16.mxu1 %vm2747_vm2, %v2746_v10 }
 0x635   : > { %v1252_v25 = vpop.xlane.xlu0 %1251 }
 0x636   : > { %v1253_v29 = vmul.f32 0.03125, %v1252_v25 }
 0x638   : > { %v1254_v31 = vsub.f32 %v3030_v14, %v1253_v29 }
 0x63a   : > { %v1255_v36 = vmul.f32 %v1254_v31, %v1254_v31 }
 0x63c   : > { %v1256_v40 = vsel %vm426_vm1, %v1255_v36, 0.0 }
 0x6c1   : > { %v1059_v32 = vpop.f32.mrf.mxu1 }
 0x6c2   : > { %v1060_v33 = vadd.f32 %v3041_v30, %v1059_v32 }
 0x6c3   : > { %v2393_v34 = vpop.f32.mrf.mxu1 }
 0x6c4   : > { %v3046_v35 = vadd.f32 %v1060_v33, %v2919_v2  ;;  %v2592_v2 = vld [vmem:[%s2904_s22 + $0x8] sm:$0xff]  }
 0x6c5   : > { %v1062_v37 = vpop.f32.mrf.mxu1  ;;  %2396 = vmatpush3.bf16.msra.mxu0 %v2592_v2 }
 0x6c6   : > { %v1066_v38 = vsel %vm426_vm1, %v3046_v35, 0.0  ;;  %2397 = vmatprep.subr.bf16.mxu0 %v2746_v10 }
 0x6c7   : > { %1067 = vadd.xlane.f32.xlu1 %v1066_v38  ;;  %v2394_v39 = vpop.f32.mrf.mxu1 }
 0x6c9   : > { %2398 = vmatpush3.bf16.msra.mxu0 %v2593_v46 }
 0x6ca   : > { %2415 = vmatprep.subr.bf16.mxu0 %v2746_v10 }
 0x6cb   : > { %1257 = vadd.xlane.f32.xlu1 %v1256_v40 }
 0x750   : > { %v1068_v41 = vpop.xlane.xlu1 %1067 }
 0x751   : > { %v1069_v42 = vmul.f32 0.03125, %v1068_v41 }
 0x753   : > { %v1070_v43 = vsub.f32 %v3046_v35, %v1069_v42 }
 0x754   : > { %v1258_v47 = vpop.xlane.xlu1 %1257 }
 0x755   : > { %v1071_v44 = vmul.f32 %v1070_v43, %v1070_v43  ;;  %v1259_v48 = vmul.f32 0.03125, %v1258_v47 }
 0x757   : > { %v1072_v45 = vsel %vm426_vm1, %v1071_v44, 0.0  ;;  %v1260_v49 = vadd.f32 1e-06, %v1259_v48  ;;  %v3130_v48 = vld [vmem:[%s2889_s11 + $0x8] ss:$0 sm:$0xff]  ;;  %s3303_s11 = smov 48  }
 0x758   : > { %1073 = vadd.xlane.f32.xlu0 %v1072_v45 }
 0x759   : > { %2626 = vrsqrt.f32 %v1260_v49 }
 0x766   : > { %v2627_v53 = vpop.eup %2626 }
 0x767   : > { %v1262_v58 = vmul.f32 %v2627_v53, %v1254_v31 }
 0x769   : > { %v1263_v63 = vmul.f32 %v2937_v17, %v1262_v58  ;;  %v2596_v17 = vld [vmem:[%s2914_s30 + $0x18] sm:$0xff]  }
 0x76a   : > { %2404 = vmatpush3.bf16.msra.mxu1 %v2596_v17 }
 0x76b   : > { %v1264_v1 = vadd.f32 %v2940_v19, %v1263_v63  ;;  %2405 = vmatprep.subr.bf16.mxu1 %v2746_v10  ;;  %v2599_v19 = vld [vmem:[%s2914_s30] sm:$0xff]  }
 0x76d   : > { %v1265_v3 = vpack.c.bf16 %v1264_v1, %v1264_v1 }
 0x76e   : > { %2406 = vmatpush3.bf16.msra.mxu1 %v2597_v4 }
 0x76f   : > { %2407 = vmatprep.subr.bf16.mxu1 %v2746_v10 }
 0x772   : > { %2408 = vmatpush3.bf16.msra.mxu1 %v2598_v5 }
 0x773   : > { %2409 = vmatprep.subr.bf16.mxu1 %v2746_v10 }
 0x776   : > { %2410 = vmatpush3.bf16.msra.mxu1 %v2599_v19 }
 0x777   : > { %2429 = vmatprep.subr.bf16.mxu1 %v2746_v10 }
 0x7e1   : > { %v1074_v50 = vpop.xlane.xlu0 %1073 }
 0x7e2   : > { %v1075_v51 = vmul.f32 0.03125, %v1074_v50 }
 0x7e4   : > { %v1076_v52 = vadd.f32 1e-06, %v1075_v51 }
 0x7e6   : > { %2628 = vrsqrt.f32 %v1076_v52 }
 0x7f3   : > { %v2629_v54 = vpop.eup %2628 }
 0x7f4   : > { %v1078_v56 = vmul.f32 %v2629_v54, %v1070_v43 }
 0x7f6   : > { %v1083_v59 = vmul.f32 %v3058_v55, %v1078_v56 }
 0x7f8   : > { %v1088_v60 = vadd.f32 %v3061_v57, %v1083_v59 }
 0x7fa   : > { %v1089_v62 = vpack.c.bf16 %v1088_v60, %v1088_v60 }
 0x7fc   : > { %2400 = vmatmul.mubr.msk.bf16.vlgmr.msra.gmra.mxu0 %vm426_vm1, %v1089_v62 }
 0x7fd   : > { %2416 = vmatpush3.bf16.msra.mxu0 %v2594_v61  ;;  %2419 = vmatprep.mubr.msk.bf16.mxu0 %vm2747_vm2, %v2746_v10 }
 0x7fe   : > { %2417 = vmatprep.subr.bf16.mxu0 %v2746_v10 }
 0x801   : > { %2418 = vmatpush3.bf16.msra.mxu0 %v2595_v0 }
 0x802   : > { %2423 = vmatprep.subr.bf16.mxu0 %v2746_v10 }
 0x804   : > { %2420 = vmatmul.mubr.msk.bf16.vlgmr.msra.gmra.mxu0 %vm426_vm1, %v1265_v3 }
 0x805   : > { %2425 = vmatprep.mubr.msk.bf16.mxu0 %vm2747_vm2, %v2746_v10 }
 0x8bc   : > { %v1150_v7 = vpop.f32.mrf.mxu0 }
 0x8bd   : > { %v1151_v8 = vadd.f32 %v3090_v6, %v1150_v7 }
 0x8be   : > { %v2401_v9 = vpop.f32.mrf.mxu0 }
 0x8bf   : > { %v1157_v11 = vmul.f32 %v1151_v8, %v1151_v8 }
 0x8c0   : > { %v1153_v12 = vpop.f32.mrf.mxu0 }
 0x8c1   : > { %v1158_v13 = vmul.f32 %v1157_v11, %v1151_v8 }
 0x8c2   : > { %v2402_v16 = vpop.f32.mrf.mxu0 }
 0x8c3   : > { %v1159_v18 = vmul.f32 0.044715, %v1158_v13 }
 0x8c4   : > { %v3093_v20 = vpop.f32.mrf.mxu0 }
 0x8c5   : > { %v1160_v21 = vadd.f32 %v1159_v18, %v1151_v8  ;;  %v1325_v22 = vadd.f32 %v2950_v24, %v3093_v20  ;;  %v1328_v26 = vadd.f32 %v3093_v20, %v2947_v23  ;;  %v1156_v24 = vmul.f32 0.5, %v1151_v8 }
 0x8c6   : > { %v2421_v27 = vpop.f32.mrf.mxu0 }
 0x8c7   : > { %v1161_v28 = vmul.f32 0.7978846, %v1160_v21  ;;  %v1326_v25 = vmul.f32 0.35355338, %v1325_v22  ;;  %v1329_v29 = vpack.c.bf16 %v1328_v26, %v1328_v26 }
 0x8c8   : > { %v1322_v31 = vpop.f32.mrf.mxu0 }
 0x8c9   : > { %2630 = vtanh.f32 %v1161_v28  ;;  %1446 = vrot.lane.b32.xlu1 %v1329_v29, %s2749_s1  ;;  %1333 = vrot.lane.b32.xlu0 %v1329_v29, %s2750_s24  ;;  %v1327_v33 = vpack.c.bf16 %v1326_v25, %v1326_v25 }
 0x8ca   : > { %v2422_v32 = vpop.f32.mrf.mxu0 }
 0x8cd   : > { %1557 = vrot.lane.b32.xlu0 %v1329_v29, %s2751_s26  ;;  %1444 = vrot.lane.b32.xlu1 %v1327_v33, %s2752_s17 }
 0x8d1   : > { %1668 = vrot.lane.b32.xlu0 %v1329_v29, %s2754_s10  ;;  %1555 = vrot.lane.b32.xlu1 %v1327_v33, %s2753_s20 }
 0x8d5   : > { %1666 = vrot.lane.b32.xlu1 %v1327_v33, %s2755_s15 }
 0x8d6   : > { %v2631_v23 = vpop.eup %2630 }
 0x8d7   : > { %v1163_v34 = vadd.f32 1.0, %v2631_v23 }
 0x8d9   : > { %v1164_v36 = vmul.f32 %v1163_v34, %v1156_v24  ;;  %v1330_v24 = vadd.f32 %v3093_v20, %v2992_v15 }
 0x8db   : > { %v1165_v37 = vpack.c.bf16 %v1164_v36, %v1164_v36  ;;  %v1331_v34 = vpack.c.bf16 %v1330_v24, %v1330_v24 }
 0x8dd   : > { %2412 = vmatmul.mubr.msk.bf16.vlgmr.msra.gmra.mxu1 %vm1202_vm7, %v1165_v37 }
 0x8de   : > { %2431 = vmatprep.mubr.msk.bf16.mxu1 %vm2747_vm2, %v2746_v10 }
 0x93b   : > { %v1334_v38 = vpop.permute.xlu0 %1333  ;;  %v1447_v40 = vpop.permute.xlu1 %1446 }
 0x93c   : > { %v1339_v39 = vsel %vm541_vm3, %v1334_v38, 0  ;;  %v1452_v41 = vsel %vm541_vm3, %v1447_v40, 0 }
 0x93d   : > { %2424 = vmatpush3.bf16.xpose.msra.mxu0 %v1339_v39 }
 0x93e   : > { %2435 = vmatprep.subr.bf16.mxu0 %v2746_v10 }
 0x93f   : > { %v1558_v42 = vpop.permute.xlu0 %1557  ;;  %v1445_v43 = vpop.permute.xlu1 %1444 }
 0x940   : > { %v1563_v44 = vsel %vm541_vm3, %v1558_v42, 0 }
 0x943   : > { %v1669_v45 = vpop.permute.xlu0 %1668  ;;  %v1556_v2 = vpop.permute.xlu1 %1555 }
 0x944   : > { %2426 = vmatmul.mubr.msk.bf16.vlgmr.msra.gmra.mxu0 %vm541_vm3, %v1327_v33  ;;  %v1674_v46 = vsel %vm541_vm3, %v1669_v45, 0 }
 0x945   : > { %2436 = vmatpush3.bf16.xpose.msra.mxu0 %v1452_v41  ;;  %2437 = vmatprep.mubr.msk.bf16.mxu0 %vm2747_vm2, %v2746_v10 }
 0x946   : > { %2447 = vmatprep.subr.bf16.mxu0 %v2746_v10 }
 0x947   : > { %v1667_v47 = vpop.permute.xlu1 %1666 }
 0x94c   : > { %2438 = vmatmul.mubr.msk.bf16.vlgmr.msra.gmra.mxu0 %vm541_vm3, %v1445_v43 }
 0x94d   : > { %2448 = vmatpush3.bf16.xpose.msra.mxu0 %v1563_v44  ;;  %2449 = vmatprep.mubr.msk.bf16.mxu0 %vm2747_vm2, %v2746_v10 }
 0x94e   : > { %2459 = vmatprep.subr.bf16.mxu0 %v2746_v10 }
 0x954   : > { %2450 = vmatmul.mubr.msk.bf16.vlgmr.msra.gmra.mxu0 %vm541_vm3, %v1556_v2 }
 0x955   : > { %2460 = vmatpush3.bf16.xpose.msra.mxu0 %v1674_v46  ;;  %2461 = vmatprep.mubr.msk.bf16.mxu0 %vm2747_vm2, %v2746_v10 }
 0x956   : > { %2471 = vmatprep.subr.bf16.mxu0 %v2746_v10 }
 0x95c   : > { %2462 = vmatmul.mubr.msk.bf16.vlgmr.msra.gmra.mxu0 %vm541_vm3, %v1667_v47 }
 0x95d   : > { %2475 = vmatprep.mubr.msk.bf16.mxu0 %vm2747_vm2, %v2746_v10 }
 0x99d   : > { %v1240_v49 = vpop.f32.mrf.mxu1 }
 0x99e   : > { %v1241_v50 = vadd.f32 %v3130_v48, %v1240_v49 }
 0x99f   : > { %v2413_v51 = vpop.f32.mrf.mxu1 }
 0x9a0   : > { %v1246_v52 = vadd.f32 %v1241_v50, %v3046_v35 }
 0x9a1   : > { %v1243_v53 = vpop.f32.mrf.mxu1 }
 0x9a2   : > { %1247 = vst.msk [vmem:[#allocation2] sm:$0xff] %vm426_vm1, %v1246_v52 }
 0x9a3   : > { %v2414_v54 = vpop.f32.mrf.mxu1 }
 0xa04   : > { %v1375_v56 = vpop.f32.mrf.mxu0 }
 0xa05   : > { %v1381_v58 = vsel %vm541_vm3, %v1375_v56, -inf }
 0xa06   : > { %1382 = vmax.xlane.f32.xlu0 %v1381_v58  ;;  %v2427_v59 = vpop.f32.mrf.mxu0 }
 0xa08   : > { %v1378_v60 = vpop.f32.mrf.mxu0 }
 0xa0a   : > { %v2428_v61 = vpop.f32.mrf.mxu0 }
 0xa0c   : > { %v1488_v62 = vpop.f32.mrf.mxu0 }
 0xa0d   : > { %v1494_v63 = vsel %vm541_vm3, %v1488_v62, -inf }
 0xa0e   : > { %1495 = vmax.xlane.f32.xlu1 %v1494_v63  ;;  %v2439_v0 = vpop.f32.mrf.mxu0 }
 0xa10   : > { %v1491_v1 = vpop.f32.mrf.mxu0 }
 0xa12   : > { %v2440_v3 = vpop.f32.mrf.mxu0 }
 0xa14   : > { %v1599_v17 = vpop.f32.mrf.mxu0 }
 0xa15   : > { %v1605_v35 = vsel %vm541_vm3, %v1599_v17, -inf }
 0xa16   : > { %1606 = vmax.xlane.f32.xlu0 %v1605_v35  ;;  %v2451_v4 = vpop.f32.mrf.mxu0 }
 0xa18   : > { %v1602_v5 = vpop.f32.mrf.mxu0 }
 0xa1a   : > { %v2452_v19 = vpop.f32.mrf.mxu0 }
 0xa1c   : > { %v1710_v7 = vpop.f32.mrf.mxu0 }
 0xa1d   : > { %v1716_v8 = vsel %vm541_vm3, %v1710_v7, -inf }
 0xa1e   : > { %1717 = vmax.xlane.f32.xlu0 %v1716_v8  ;;  %v2463_v9 = vpop.f32.mrf.mxu0 }
 0xa20   : > { %v1713_v11 = vpop.f32.mrf.mxu0 }
 0xa21   : > { %v2600_v11 = vld [vmem:[%s2899_s14 + $0x8] sm:$0xff]  }
 0xa22   : > { %v2464_v12 = vpop.f32.mrf.mxu0  ;;  %2472 = vmatpush3.bf16.msra.mxu0 %v2600_v11 }
 0xa23   : > { %v2601_v12 = vld [vmem:[%s2899_s14] sm:$0xff]   ;;  %2473 = vmatprep.subr.bf16.mxu0 %v2746_v10 }
 0xa26   : > { %2474 = vmatpush3.bf16.msra.mxu0 %v2601_v12 }
 0xa27   : > { %2487 = vmatprep.subr.bf16.mxu0 %v2746_v10 }
 0xa8f   : > { %v1383_v13 = vpop.xlane.xlu0 %1382 }
 0xa90   : > { %v1384_v16 = vsub.f32 %v1375_v56, %v1383_v13 }
 0xa92   : > { %v1385_v18 = vmul.f32 1.442695, %v1384_v16 }
 0xa94   : > { %2632 = vpow2.f32 %v1385_v18 }
 0xa97   : > { %v1496_v21 = vpop.xlane.xlu1 %1495 }
 0xa98   : > { %v1497_v22 = vsub.f32 %v1488_v62, %v1496_v21 }
 0xa9a   : > { %v1498_v26 = vmul.f32 1.442695, %v1497_v22 }
 0xa9c   : > { %2634 = vpow2.f32 %v1498_v26 }
 0xa9f   : > { %v1607_v25 = vpop.xlane.xlu0 %1606 }
 0xaa0   : > { %v1608_v38 = vsub.f32 %v1599_v17, %v1607_v25 }
 0xaa1   : > { %v2633_v27 = vpop.eup %2632 }
 0xaa2   : > { %v1387_v28 = vsel %vm541_vm3, %v2633_v27, 0.0  ;;  %v1609_v39 = vmul.f32 1.442695, %v1608_v38 }
 0xaa3   : > { %1388 = vadd.xlane.f32.xlu1 %v1387_v28 }
 0xaa7   : > { %v1718_v29 = vpop.xlane.xlu0 %1717 }
 0xaa8   : > { %v1719_v31 = vsub.f32 %v1710_v7, %v1718_v29 }
 0xaa9   : > { %v2635_v32 = vpop.eup %2634 }
 0xaaa   : > { %v1720_v33 = vmul.f32 1.442695, %v1719_v31  ;;  %v1500_v23 = vsel %vm541_vm3, %v2635_v32, 0.0 }
 0xaab   : > { %1501 = vadd.xlane.f32.xlu0 %v1500_v23 }
 0xaac   : > { %2636 = vpow2.f32 %v1720_v33 }
 0xaad   : > { %2638 = vpow2.f32 %v1609_v39 }
 0xab4   : > { %1394 = vrot.lane.b32.xlu1 %v1331_v34, %s2756_s19 }
 0xab9   : > { %v2637_v36 = vpop.eup %2636 }
 0xaba   : > { %v1722_v37 = vsel %vm541_vm3, %v2637_v36, 0.0  ;;  %v2639_v40 = vpop.eup %2638 }
 0xabb   : > { %1723 = vadd.xlane.f32.xlu0 %v1722_v37  ;;  %v1611_v41 = vsel %vm541_vm3, %v2639_v40, 0.0 }
 0xad1   : > { %1506 = vrot.lane.b32.xlu0 %v1331_v34, %s2757_s23 }
 0xad8   : > { %1612 = vadd.xlane.f32.xlu1 %v1611_v41 }
 0xae9   : > { %1617 = vrot.lane.b32.xlu1 %v1331_v34, %s3303_s11 }
 0xaed   : > { %1728 = vrot.lane.b32.xlu1 %v1331_v34, %s3304_s21 }
 0xb2c   : > { %v1389_v15 = vpop.xlane.xlu1 %1388 }
 0xb2d   : > { %2640 = vrcp.f32 %v1389_v15 }
 0xb30   : > { %v1395_v20 = vpop.permute.xlu1 %1394 }
 0xb31   : > { %v1400_v42 = vsel %vm606_vm4, %v1395_v20, 0 }
 0xb32   : > { %2430 = vmatpush3.bf16.msra.mxu1 %v1400_v42 }
 0xb33   : > { %2441 = vmatprep.subr.bf16.mxu1 %v2746_v10 }
 0xb34   : > { %v1502_v43 = vpop.xlane.xlu0 %1501 }
 0xb35   : > { %2642 = vrcp.f32 %v1502_v43 }
 0xb3a   : > { %v2641_v44 = vpop.eup %2640 }
 0xb3b   : > { %v1391_v45 = vmul.f32 %v2641_v44, %v2633_v27 }
 0xb3d   : > { %v1392_v2 = vpack.c.bf16 %v1391_v45, %v1391_v45 }
 0xb3f   : > { %2432 = vmatmul.mubr.msk.bf16.vlgmr.msra.gmra.mxu1 %vm541_vm3, %v1392_v2 }
 0xb40   : > { %2443 = vmatprep.mubr.msk.bf16.mxu1 %vm2747_vm2, %v2746_v10 }
 0xb42   : > { %v2643_v46 = vpop.eup %2642 }
 0xb43   : > { %v1504_v49 = vmul.f32 %v2643_v46, %v2635_v32  ;;  %v2602_v46 = vld [vmem:[%s2904_s22 + $0x8] sm:$0xff]  }
 0xb44   : > { %v1724_v47 = vpop.xlane.xlu0 %1723 }
 0xb45   : > { %v1505_v52 = vpack.c.bf16 %v1504_v49, %v1504_v49 }
 0xb48   : > { %v1507_v50 = vpop.permute.xlu0 %1506 }
 0xb49   : > { %v1512_v51 = vsel %vm606_vm4, %v1507_v50, 0 }
 0xb4a   : > { %2442 = vmatpush3.bf16.msra.mxu1 %v1512_v51 }
 0xb4b   : > { %2453 = vmatprep.subr.bf16.mxu1 %v2746_v10 }
 0xb4d   : > { %2444 = vmatmul.mubr.msk.bf16.vlgmr.msra.gmra.mxu1 %vm541_vm3, %v1505_v52 }
 0xb4e   : > { %2455 = vmatprep.mubr.msk.bf16.mxu1 %vm2747_vm2, %v2746_v10 }
 0xb61   : > { %v1613_v53 = vpop.xlane.xlu1 %1612 }
 0xb62   : > { %2644 = vrcp.f32 %v1613_v53 }
 0xb63   : > { %2646 = vrcp.f32 %v1724_v47  ;;  %v2603_v47 = vld [vmem:[%s2904_s22] sm:$0xff]  }
 0xb65   : > { %v1618_v54 = vpop.permute.xlu1 %1617 }
 0xb66   : > { %v1623_v56 = vsel %vm606_vm4, %v1618_v54, 0 }
 0xb67   : > { %2454 = vmatpush3.bf16.msra.mxu1 %v1623_v56  ;;  %v2604_v56 = vld [vmem:[%s2914_s30 + $0x18] sm:$0xff]  }
 0xb68   : > { %2465 = vmatprep.subr.bf16.mxu1 %v2746_v10 }
 0xb69   : > { %v1729_v60 = vpop.permute.xlu1 %1728 }
 0xb6a   : > { %v1734_v63 = vsel %vm606_vm4, %v1729_v60, 0  ;;  %v2607_v60 = vld [vmem:[%s2914_s30] sm:$0xff]  }
 0xb6f   : > { %v2645_v58 = vpop.eup %2644 }
 0xb70   : > { %v1615_v59 = vmul.f32 %v2645_v58, %v2639_v40  ;;  %v2647_v62 = vpop.eup %2646  ;;  %v2605_v58 = vld [vmem:[%s2914_s30 + $0x10] sm:$0xff]  }
 0xb71   : > { %v1726_v0 = vmul.f32 %v2647_v62, %v2637_v36 }
 0xb72   : > { %v1616_v61 = vpack.c.bf16 %v1615_v59, %v1615_v59  ;;  %v2606_v59 = vld [vmem:[%s2914_s30 + $0x8] sm:$0xff]  }
 0xb73   : > { %v1727_v1 = vpack.c.bf16 %v1726_v0, %v1726_v0 }
 0xb74   : > { %2456 = vmatmul.mubr.msk.bf16.vlgmr.msra.gmra.mxu1 %vm541_vm3, %v1616_v61 }
 0xb75   : > { %2466 = vmatpush3.bf16.msra.mxu1 %v1734_v63  ;;  %2467 = vmatprep.mubr.msk.bf16.mxu1 %vm2747_vm2, %v2746_v10 }
 0xb76   : > { %2479 = vmatprep.subr.bf16.mxu1 %v2746_v10 }
 0xb7c   : > { %2468 = vmatmul.mubr.msk.bf16.vlgmr.msra.gmra.mxu1 %vm541_vm3, %v1727_v1 }
 0xb7d   : > { %2483 = vmatprep.mubr.msk.bf16.mxu1 %vm2747_vm2, %v2746_v10  ;;  %2480 = vmatpush3.bf16.msra.mxu1 %v2602_v46 }
 0xb7e   : > { %2481 = vmatprep.subr.bf16.mxu1 %v2746_v10 }
 0xb81   : > { %2482 = vmatpush3.bf16.msra.mxu1 %v2603_v47 }
 0xbff   : > { %v1436_v3 = vpop.f32.mrf.mxu1 }
 0xc00   : > { %v1442_v32 = vpack.c.bf16 %v1436_v3, %v1436_v3 }
 0xc01   : > { %v2433_v17 = vpop.f32.mrf.mxu1 }
 0xc03   : > { %v1439_v35 = vpop.f32.mrf.mxu1 }
 0xc05   : > { %v2434_v4 = vpop.f32.mrf.mxu1 }
 0xc0d   : > { %v1548_v5 = vpop.f32.mrf.mxu1 }
 0xc0e   : > { %v1554_v19 = vpack.c.bf16 %v1548_v5, %v1548_v5 }
 0xc0f   : > { %v2445_v7 = vpop.f32.mrf.mxu1 }
 0xc10   : > { %1778 = vrot.lane.b32.xlu0 %v1554_v19, %s2760_s0 }
 0xc11   : > { %v1551_v8 = vpop.f32.mrf.mxu1 }
 0xc13   : > { %v2446_v9 = vpop.f32.mrf.mxu1 }
 0xc34   : > { %v1659_v13 = vpop.f32.mrf.mxu1 }
 0xc35   : > { %v1665_v16 = vpack.c.bf16 %v1659_v13, %v1659_v13 }
 0xc36   : > { %v2457_v18 = vpop.f32.mrf.mxu1 }
 0xc37   : > { %1781 = vrot.lane.b32.xlu1 %v1665_v16, %s2761_s16 }
 0xc38   : > { %v1662_v21 = vpop.f32.mrf.mxu1 }
 0xc3a   : > { %v2458_v22 = vpop.f32.mrf.mxu1 }
 0xc3c   : > { %v1770_v26 = vpop.f32.mrf.mxu1 }
 0xc3d   : > { %v1776_v27 = vpack.c.bf16 %v1770_v26, %v1770_v26 }
 0xc3e   : > { %v2469_v28 = vpop.f32.mrf.mxu1 }
 0xc3f   : > { %1784 = vrot.lane.b32.xlu0 %v1776_v27, %s3305_s12 }
 0xc40   : > { %v1773_v25 = vpop.f32.mrf.mxu1 }
 0xc42   : > { %v2470_v29 = vpop.f32.mrf.mxu1 }
 0xc82   : > { %v1779_v31 = vpop.permute.xlu0 %1778 }
 0xc83   : > { %v1788_v23 = vsel %vm541_vm3, %v1442_v32, %v1779_v31 }
 0xca9   : > { %v1782_v33 = vpop.permute.xlu1 %1781 }
 0xcaa   : > { %v1790_v24 = vsel %vm997_vm5, %v1788_v23, %v1782_v33 }
 0xcb1   : > { %v1785_v34 = vpop.permute.xlu0 %1784 }
 0xcb2   : > { %v1792_v36 = vsel %vm1000_vm6, %v1790_v24, %v1785_v34 }
 0xcb3   : > { %2476 = vmatmul.mubr.msk.bf16.vlgmr.msra.gmra.mxu0 %vm426_vm1, %v1792_v36 }
 0xcb4   : > { %2495 = vmatprep.mubr.msk.bf16.mxu0 %vm2747_vm2, %v2746_v10  ;;  %2488 = vmatpush3.bf16.msra.mxu0 %v2604_v56 }
 0xcb5   : > { %2489 = vmatprep.subr.bf16.mxu0 %v2746_v10 }
 0xcb8   : > { %2490 = vmatpush3.bf16.msra.mxu0 %v2605_v58 }
 0xcb9   : > { %2491 = vmatprep.subr.bf16.mxu0 %v2746_v10 }
 0xcbc   : > { %2492 = vmatpush3.bf16.msra.mxu0 %v2606_v59 }
 0xcbd   : > { %2493 = vmatprep.subr.bf16.mxu0 %v2746_v10 }
 0xcc0   : > { %2494 = vmatpush3.bf16.msra.mxu0 %v2607_v60 }
 0xd73   : > { %v1845_v37 = vpop.f32.mrf.mxu0 }
 0xd74   : > { %v1846_v38 = vadd.f32 %v3041_v30, %v1845_v37 }
 0xd75   : > { %v2477_v39 = vpop.f32.mrf.mxu0 }
 0xd76   : > { %v1851_v40 = vadd.f32 %v1846_v38, %v3030_v14 }
 0xd77   : > { %v1848_v41 = vpop.f32.mrf.mxu0 }
 0xd78   : > { %v1852_v15 = vsel %vm426_vm1, %v1851_v40, 0.0 }
 0xd79   : > { %1853 = vadd.xlane.f32.xlu1 %v1852_v15  ;;  %v2478_v20 = vpop.f32.mrf.mxu0 }
 0xe02   : > { %v1854_v42 = vpop.xlane.xlu1 %1853 }
 0xe03   : > { %v1855_v43 = vmul.f32 0.03125, %v1854_v42 }
 0xe05   : > { %v1856_v44 = vsub.f32 %v1851_v40, %v1855_v43 }
 0xe07   : > { %v1857_v45 = vmul.f32 %v1856_v44, %v1856_v44 }
 0xe09   : > { %v1858_v2 = vsel %vm426_vm1, %v1857_v45, 0.0 }
 0xe0a   : > { %1859 = vadd.xlane.f32.xlu0 %v1858_v2 }
 0xe93   : > { %v1860_v14 = vpop.xlane.xlu0 %1859 }
 0xe94   : > { %v1861_v30 = vmul.f32 0.03125, %v1860_v14 }
 0xe96   : > { %v1862_v49 = vadd.f32 1e-06, %v1861_v30 }
 0xe98   : > { %2648 = vrsqrt.f32 %v1862_v49 }
 0xea5   : > { %v2649_v50 = vpop.eup %2648 }
 0xea6   : > { %v1864_v51 = vmul.f32 %v2649_v50, %v1856_v44 }
 0xea8   : > { %v1865_v52 = vmul.f32 %v3058_v55, %v1864_v51 }
 0xeaa   : > { %v1866_v53 = vadd.f32 %v3061_v57, %v1865_v52 }
 0xeac   : > { %v1867_v54 = vpack.c.bf16 %v1866_v53, %v1866_v53 }
 0xeae   : > { %2484 = vmatmul.mubr.msk.bf16.vlgmr.msra.gmra.mxu1 %vm426_vm1, %v1867_v54 }
 0xf6e   : > { %v1928_v55 = vpop.f32.mrf.mxu1 }
 0xf6f   : > { %v1929_v57 = vadd.f32 %v3090_v6, %v1928_v55 }
 0xf70   : > { %v2485_v61 = vpop.f32.mrf.mxu1 }
 0xf71   : > { %v1935_v62 = vmul.f32 %v1929_v57, %v1929_v57  ;;  %v1934_v5 = vmul.f32 0.5, %v1929_v57 }
 0xf72   : > { %v1931_v63 = vpop.f32.mrf.mxu1 }
 0xf73   : > { %v1936_v0 = vmul.f32 %v1935_v62, %v1929_v57 }
 0xf74   : > { %v2486_v1 = vpop.f32.mrf.mxu1 }
 0xf75   : > { %v1937_v3 = vmul.f32 0.044715, %v1936_v0 }
 0xf77   : > { %v1938_v17 = vadd.f32 %v1937_v3, %v1929_v57 }
 0xf79   : > { %v1939_v35 = vmul.f32 0.7978846, %v1938_v17 }
 0xf7b   : > { %2650 = vtanh.f32 %v1939_v35 }
 0xf88   : > { %v2651_v4 = vpop.eup %2650 }
 0xf89   : > { %v1941_v19 = vadd.f32 1.0, %v2651_v4 }
 0xf8b   : > { %v1942_v7 = vmul.f32 %v1941_v19, %v1934_v5 }
 0xf8d   : > { %v1943_v8 = vpack.c.bf16 %v1942_v7, %v1942_v7 }
 0xf8f   : > { %2496 = vmatmul.mubr.msk.bf16.vlgmr.msra.gmra.mxu0 %vm1202_vm7, %v1943_v8 }
0x104f   : > { %v2013_v10 = vpop.f32.mrf.mxu0 }
0x1050   : > { %v2014_v9 = vadd.f32 %v3130_v48, %v2013_v10 }
0x1051   : > { %v2497_v6 = vpop.f32.mrf.mxu0  ;;  %2024 = sbr.rel (%p2259_p1) target bundleno = 4189 (0x105d), region = 56 }
0x1052   : > { %v2019_v11 = vadd.f32 %v2014_v9, %v1851_v40 }
0x1053   : > { %v2016_v12 = vpop.f32.mrf.mxu0 }
0x1054   : > { %2020 = vst.msk [vmem:[#allocation2 + $0x8] sm:$0xff] %vm426_vm1, %v2019_v11 }
0x1055   : > { %v2498_v13 = vpop.f32.mrf.mxu0 }
0x1056   : > { %v2025_v16 = vld [vmem:[#allocation2] sm:$0xff] }
0x1057   : > { %2027 = vst.msk [vmem:[%s2916_s18] sm:$0xff] %vm426_vm1, %v2025_v16 }
0x105b   : > { %v2026_v18 = vld [vmem:[#allocation2 + $0x8] sm:$0xff] }
0x105c   : > { %2028 = vst.msk [vmem:[%s2916_s18 + $0x8] sm:$0xff] %vm426_vm1, %v2026_v18 }
0x105d PF: > { %s2270_s14 = sshll.u32 %s2732_s28, 8  ;;  %s2043_s27 = sshll.u32 %s2916_s18, 4  ;;  %s3215_s27 = int_to_ptr.vmem [resolvable:$true] %s2043_s27 }
0x105e   : > { %s3212_s1 = scalar_lea.hbm %s3278_s7, %s2270_s14  ;;  %s3306_s24 = sand.u32 1, %s2720_s25  }
0x105f   : > { %s3219_s26 = scalar_lea.sflag [#allocation4], %s3306_s24  ;;  %s2652_s17 = scalar_lea.vmem %s3215_s27, 256 }
0x1060   : > { %p2653_p2 = scmp.ne.s32.totalorder %s3215_s27, %s2652_s17  ;;  %s2763_s28 = smov [#allocation3]  }
0x1061   : > { %s2656_s20 = sshll.u32 %s2763_s28, 4  ;;  %s2657_s20 = int_to_ptr.vmem [resolvable:$false] %s2656_s20 }
0x1062   : > { %p2654_p4 = pnand %p2653_p2, %p2854_p3  ;;  %s2658_s10 = scalar_lea.vmem %s2657_s20, 512 }
0x1063   : > { %p2659_p6 = scmp.lt.s32.totalorder %s3215_s27, %s2657_s20  ;;  %p2660_p7 = scmp.lt.s32.totalorder %s2658_s10, %s2652_s17 }
0x1064   : > { %p2655_p5 = pneg %p2654_p4 }
0x1065   : > { %p2661_p8 = por %p2660_p7, %p2659_p6 }
0x1067   : > { %p2662_p10 = pnand %p2661_p8, %p2655_p5 }
0x1069   : > { %2665 = shalt.err (!%p2662_p10)
}
0x106a   : > { %s2666_s18 = scalar_lea.hbm %s3212_s1, 256  ;;  %s2670_s23 = scalar_lea.hbm %s3278_s7, 512 }
0x106b   : > { %p2667_p11 = scmp.ne.s32.totalorder %s3212_s1, %s2666_s18  ;;  %p2671_p0 = scmp.lt.s32.totalorder %s3212_s1, %s3278_s7 }
0x106c   : > { %p2672_p1 = scmp.lt.s32.totalorder %s2670_s23, %s2666_s18 }
0x106d   : > { %p2668_p12 = pnand %p2667_p11, %p2854_p3 }
0x106e   : > { %p2673_p2 = por %p2672_p1, %p2671_p0 }
0x106f   : > { %p2669_p13 = pneg %p2668_p12 }
0x1071   : > { %p2674_p4 = pnand %p2673_p2, %p2669_p13 }
0x1073   : > { %2677 = shalt.err (!%p2674_p4)
}
0x1074   : > { %s2764_s29 = smov 128  }
0x1075   : > { %2499 = dma.vmem_to_hbm [thread:$0]  (%p2854_p3), %s3215_s27, 256, %s3212_s1, %s3219_s26, %s2764_s29, %s2764_s29, %s2760_s0  }
0x1076 PF: > { %s3307_s11 = sld [smem:[#allocation6_spill]]  ;;  %p2505_p5 = scmp.ge.s32.totalorder %s2744_s8, 2 }
0x1078   : > { %p2502_p6 = pnand %p2505_p5, %p2864_p9 }
0x107a   : > { %p2503_p7 = pneg %p2502_p6 }
0x107c   : > { %s2058_s12 = sand.u32 1, %s3307_s11  }
0x107d   : > { %s2059_s14 = scalar_lea.sflag [#allocation4], %s2058_s12 }
0x107e   : > { %2711 = dma.done.wait (%p2503_p7), %s2059_s14, 256  }
0x107f   : > { %2713 = vsyncadd (%p2503_p7), %s2059_s14, 4294967040  ;;  %s20_s8 = sadd.s32 1, %s2744_s8   ;;  %s3309_s13 = sld [smem:[#allocation7_spill]] }
0x1080   : > { %p17_p8 = scmp.ge.s32.totalorder %s20_s8, 8   ;;  %s3310_s26 = sld [smem:[#allocation13_spill]] }
0x1081   : > { %s3311_s27 = sld [smem:[#allocation8_spill]]  ;;  %s3315_s24 = smov %s2720_s25 }
0x1082   : > { %s3312_s28 = sld [smem:[#allocation9_spill]]  ;;  %19 = sbr.rel (!%p17_p8) target bundleno = 8 (0x8), region = 110 }
0x1083   : > { %s3313_s29 = sld [smem:[#allocation10_spill]] }
0x1084   : > { %s3314_s30 = sld [smem:[#allocation11_spill]] }
0x1085   : > { %s3316_s25 = smov %s3309_s13 }
0x1087   :  { %2064 = vsyncpa [#allocation4], 1 }
0x1088   :  { %2066 = vsyncpa [#allocation4 + $0x1], 1 }

</bundles_post_ra>
